<compile_context>
chip_gen: v5e
topology: v5e:2x2
jax: 0.10.0
libtpu: 0.0.40
codegen_flags: <defaults>
</compile_context>

<pallas_src>
import jax
import jax.numpy as jnp
from jax.experimental import pallas as pl
from jax.experimental.pallas import tpu as pltpu

EPS = 1e-5  # nn.BatchNorm2d default eps


def make_conv_stats_kernel(img_w):
    """Pass 1: 3x3 conv as 9 shifted MXU dots + per-image BN partial sums."""

    def kernel(x_ref, w_ref, mask_ref, y_ref, sum_ref, ssq_ref):
        # x_ref   : (1, H*W + 2, Cin)   flattened NHWC image (+2 zero rows)
        # w_ref   : (9, Cin, Cp)        conv taps, Cout padded to Cp (lane dense)
        # mask_ref: (L, 1)              1.0 for valid output columns, 0.0 for wrap
        # y_ref   : (1, L, Cp)          conv output, L = Ho * W (incl. wrap cols)
        # sum_ref : (1, 1, Cp)          per-image per-channel sum (valid pixels)
        # ssq_ref : (1, 1, Cp)          per-image per-channel sum of squares
        L = y_ref.shape[1]
        cp = y_ref.shape[2]
        x = x_ref[0]                                   # (Lin, Cin)

        acc = jnp.zeros((L, cp), jnp.float32)
        for kh in range(3):
            for kw in range(3):
                off = kh * img_w + kw                  # static shift
                acc = acc + jnp.dot(
                    x[off:off + L, :], w_ref[kh * 3 + kw],
                    preferred_element_type=jnp.float32)

        y_ref[0] = acc

        # BN batch statistics over valid pixels only (mask kills wrap columns).
        acc_m = acc * mask_ref[...]                    # (L, Cp)
        sum_ref[0] = jnp.sum(acc_m, axis=0, keepdims=True)
        ssq_ref[0] = jnp.sum(acc_m * acc, axis=0, keepdims=True)

    return kernel


def bn_relu_kernel(y_ref, p_ref, o_ref):
    """Pass 2: fused BN affine (y*scale + shift) + ReLU, lane-dense stores."""
    y = y_ref[0]                                       # (L, Cp)
    scale = p_ref[0:1, :]                              # (1, Cp)
    shift = p_ref[1:2, :]                              # (1, Cp)
    o_ref[0] = jnp.maximum(y * scale + shift, 0.0).astype(o_ref.dtype)


def basic_block_forward(x_nchw, w_oihw, bias, gamma, beta):
    """Conv2d(3x3, padding=0) -> BatchNorm2d(batch stats) -> ReLU.  NCHW in/out.

    `bias` is accepted for API parity but intentionally unused: a per-channel
    constant is removed exactly by the batch-stat BN mean subtraction.
    """
    del bias
    n, cin, h, w = x_nchw.shape
    cout = w_oihw.shape[0]
    ho, wo = h - 2, w - 2
    L = ho * w                       # conv rows incl. 2 wrap columns per row
    lin = h * w + 2                  # flattened image + pad for the largest tap
    cp = ((cout + 127) // 128) * 128  # lane-dense channel padding

    # ---- wrapper glue (cheap, no 9x im2col blowup) -------------------------
    x_nhwc = jnp.transpose(x_nchw, (0, 2, 3, 1))
    x_flat = x_nhwc.reshape(n, h * w, cin)
    x_flat = jnp.pad(x_flat, ((0, 0), (0, 2), (0, 0)))             # (N, Lin, Cin)

    # (Cout,Cin,3,3) -> (3,3,Cin,Cout) -> (9,Cin,Cout) -> pad Cout -> (9,Cin,Cp)
    w_taps = jnp.transpose(w_oihw, (2, 3, 1, 0)).reshape(9, cin, cout)
    w_taps = jnp.pad(w_taps, ((0, 0), (0, 0), (0, cp - cout)))

    # valid-column mask: row q of acc is pixel (q // W, q % W); q % W >= Wo wraps.
    mask = ((jnp.arange(L) % w) < wo).astype(jnp.float32).reshape(L, 1)

    # ---- pass 1: conv + per-image BN partial sums --------------------------
    conv_out, sums, ssqs = pl.pallas_call(
        make_conv_stats_kernel(w),
        out_shape=(
            jax.ShapeDtypeStruct((n, L, cp), jnp.float32),
            jax.ShapeDtypeStruct((n, 1, cp), jnp.float32),
            jax.ShapeDtypeStruct((n, 1, cp), jnp.float32),
        ),
        grid=(n,),
        in_specs=[
            pl.BlockSpec((1, lin, cin), lambda i: (i, 0, 0)),
            pl.BlockSpec((9, cin, cp), lambda i: (0, 0, 0)),
            pl.BlockSpec((L, 1), lambda i: (0, 0)),
        ],
        out_specs=(
            pl.BlockSpec((1, L, cp), lambda i: (i, 0, 0)),
            pl.BlockSpec((1, 1, cp), lambda i: (i, 0, 0)),
            pl.BlockSpec((1, 1, cp), lambda i: (i, 0, 0)),
        ),
        compiler_params=pltpu.CompilerParams(dimension_semantics=("parallel",)),
    )(x_flat, w_taps, mask)

    # ---- tiny per-channel combine: fused BN scale / shift ------------------
    m_valid = n * ho * wo
    tot_sum = jnp.sum(sums, axis=0)                    # (1, Cp)
    tot_ssq = jnp.sum(ssqs, axis=0)                    # (1, Cp)
    mean = tot_sum / m_valid
    var = jnp.maximum(tot_ssq / m_valid - mean * mean, 0.0)   # biased variance
    inv = jax.lax.rsqrt(var + EPS)
    g_pad = jnp.pad(gamma, (0, cp - cout)).reshape(1, cp)
    b_pad = jnp.pad(beta, (0, cp - cout)).reshape(1, cp)
    scale = g_pad * inv
    shift = b_pad - mean * scale
    params = jnp.concatenate([scale, shift], axis=0)   # (2, Cp) packed params

    # ---- pass 2: normalize + ReLU ------------------------------------------
    out3 = pl.pallas_call(
        bn_relu_kernel,
        out_shape=jax.ShapeDtypeStruct((n, L, cp), jnp.float32),
        grid=(n,),
        in_specs=[
            pl.BlockSpec((1, L, cp), lambda i: (i, 0, 0)),
            pl.BlockSpec((2, cp), lambda i: (0, 0)),
        ],
        out_specs=pl.BlockSpec((1, L, cp), lambda i: (i, 0, 0)),
        compiler_params=pltpu.CompilerParams(dimension_semantics=("parallel",)),
    )(conv_out, params)

    # drop wrap columns + channel padding, back to NCHW
    out = out3.reshape(n, ho, w, cp)[:, :, :wo, :cout]
    return jnp.transpose(out, (0, 3, 1, 2))


def _reference_forward(x, w, b, g, bt):
    """Pure-JAX reference of the PyTorch forward (for the correctness check)."""
    y = jax.lax.conv_general_dilated(
        x, w, window_strides=(1, 1), padding="VALID",
        dimension_numbers=("NCHW", "OIHW", "NCHW"),
    ) + b.reshape(1, -1, 1, 1)
    mean = jnp.mean(y, axis=(0, 2, 3), keepdims=True)
    var = jnp.mean((y - mean) ** 2, axis=(0, 2, 3), keepdims=True)
    y = (y - mean) * jax.lax.rsqrt(var + EPS) * g.reshape(1, -1, 1, 1) + bt.reshape(1, -1, 1, 1)
    return jnp.maximum(y, 0.0)


if __name__ == "__main__":
    # Small shapes consistent with the module: batch=2, in_ch=4, out_ch=8, 16x16.
    N, CIN, COUT, H, W = 2, 4, 8, 16, 16

    key = jax.random.PRNGKey(0)
    kx, kw_, kb = jax.random.split(key, 3)

    x = jax.random.normal(kx, (N, CIN, H, W), dtype=jnp.float32)
    fan_in = CIN * 3 * 3
    bound = 1.0 / (fan_in ** 0.5)
    conv_w = jax.random.uniform(kw_, (COUT, CIN, 3, 3), jnp.float32, -bound, bound)
    conv_b = jax.random.uniform(kb, (COUT,), jnp.float32, -bound, bound)
    bn_gamma = jnp.ones((COUT,), jnp.float32)   # BatchNorm2d default init
    bn_beta = jnp.zeros((COUT,), jnp.float32)

    out = basic_block_forward(x, conv_w, conv_b, bn_gamma, bn_beta)
    out = jax.block_until_ready(out)

    ref = _reference_forward(x, conv_w, conv_b, bn_gamma, bn_beta)
    assert out.shape == (N, COUT, H - 2, W - 2), out.shape
    assert jnp.allclose(out, ref, atol=1e-4, rtol=1e-4), float(jnp.max(jnp.abs(out - ref)))

    print("KERNEL_OK")
</pallas_src>

<mosaic_0001>
module attributes {stable_mosaic.version = 11 : i64} {
  func.func @kernel(%arg0: i32, %arg1: memref<1x258x4xf32, #tpu.memory_space<vmem>>, %arg2: memref<9x4x128xf32, #tpu.memory_space<vmem>>, %arg3: memref<224x1xf32, #tpu.memory_space<vmem>>, %arg4: memref<1x224x128xf32, #tpu.memory_space<vmem>>, %arg5: memref<1x1x128xf32, #tpu.memory_space<vmem>>, %arg6: memref<1x1x128xf32, #tpu.memory_space<vmem>>) attributes {dimension_semantics = [#tpu.dimension_semantics<parallel>], iteration_bounds = array<i64: 2>, scalar_prefetch = 0 : i64, scratch_operands = 0 : i64, tpu.core_type = #tpu.core_type<tc>, window_params = [{transform_indices = @transform_0, window_bounds = array<i64: 1, 258, 4>}, {pipeline_mode = #tpu.pipeline_mode<synchronous>, transform_indices = @transform_1, window_bounds = array<i64: 9, 4, 128>}, {pipeline_mode = #tpu.pipeline_mode<synchronous>, transform_indices = @transform_2, window_bounds = array<i64: 224, 1>}, {transform_indices = @transform_3, window_bounds = array<i64: 1, 224, 128>}, {transform_indices = @transform_4, window_bounds = array<i64: 1, 1, 128>}, {transform_indices = @transform_5, window_bounds = array<i64: 1, 1, 128>}]} {
    %c0 = arith.constant 0 : index
    %c0_0 = arith.constant 0 : index
    %c0_1 = arith.constant 0 : index
    %0 = vector.load %arg1[%c0, %c0_0, %c0_1] : memref<1x258x4xf32, #tpu.memory_space<vmem>>, vector<1x258x4xf32>
    %1 = vector.shape_cast %0 : vector<1x258x4xf32> to vector<258x4xf32>
    %cst = arith.constant 0.000000e+00 : f32
    %2 = vector.broadcast %cst : f32 to vector<224x128xf32>
    %3 = vector.extract_strided_slice %1 {offsets = [0, 0], sizes = [224, 4], strides = [1, 1]} : vector<258x4xf32> to vector<224x4xf32>
    %c0_2 = arith.constant 0 : index
    %c0_3 = arith.constant 0 : index
    %c0_4 = arith.constant 0 : index
    %4 = vector.load %arg2[%c0_2, %c0_3, %c0_4] : memref<9x4x128xf32, #tpu.memory_space<vmem>>, vector<1x4x128xf32>
    %5 = vector.shape_cast %4 : vector<1x4x128xf32> to vector<4x128xf32>
    %cst_5 = arith.constant dense<0.000000e+00> : vector<224x128xf32>
    %6 = tpu.matmul %3, %5, %cst_5 {dimension_numbers = #tpu.dot_dimension_numbers<[1], [0], [0], [1], [0, 0, 1, 1], [], []>} : vector<224x4xf32>, vector<4x128xf32>, vector<224x128xf32> -> vector<224x128xf32>
    %7 = arith.addf %2, %6 : vector<224x128xf32>
    %8 = vector.extract_strided_slice %1 {offsets = [1, 0], sizes = [224, 4], strides = [1, 1]} : vector<258x4xf32> to vector<224x4xf32>
    %c1 = arith.constant 1 : index
    %c0_6 = arith.constant 0 : index
    %c0_7 = arith.constant 0 : index
    %9 = vector.load %arg2[%c1, %c0_6, %c0_7] : memref<9x4x128xf32, #tpu.memory_space<vmem>>, vector<1x4x128xf32>
    %10 = vector.shape_cast %9 : vector<1x4x128xf32> to vector<4x128xf32>
    %cst_8 = arith.constant dense<0.000000e+00> : vector<224x128xf32>
    %11 = tpu.matmul %8, %10, %cst_8 {dimension_numbers = #tpu.dot_dimension_numbers<[1], [0], [0], [1], [0, 0, 1, 1], [], []>} : vector<224x4xf32>, vector<4x128xf32>, vector<224x128xf32> -> vector<224x128xf32>
    %12 = arith.addf %7, %11 : vector<224x128xf32>
    %13 = vector.extract_strided_slice %1 {offsets = [2, 0], sizes = [224, 4], strides = [1, 1]} : vector<258x4xf32> to vector<224x4xf32>
    %c2 = arith.constant 2 : index
    %c0_9 = arith.constant 0 : index
    %c0_10 = arith.constant 0 : index
    %14 = vector.load %arg2[%c2, %c0_9, %c0_10] : memref<9x4x128xf32, #tpu.memory_space<vmem>>, vector<1x4x128xf32>
    %15 = vector.shape_cast %14 : vector<1x4x128xf32> to vector<4x128xf32>
    %cst_11 = arith.constant dense<0.000000e+00> : vector<224x128xf32>
    %16 = tpu.matmul %13, %15, %cst_11 {dimension_numbers = #tpu.dot_dimension_numbers<[1], [0], [0], [1], [0, 0, 1, 1], [], []>} : vector<224x4xf32>, vector<4x128xf32>, vector<224x128xf32> -> vector<224x128xf32>
    %17 = arith.addf %12, %16 : vector<224x128xf32>
    %18 = vector.extract_strided_slice %1 {offsets = [16, 0], sizes = [224, 4], strides = [1, 1]} : vector<258x4xf32> to vector<224x4xf32>
    %c3 = arith.constant 3 : index
    %c0_12 = arith.constant 0 : index
    %c0_13 = arith.constant 0 : index
    %19 = vector.load %arg2[%c3, %c0_12, %c0_13] : memref<9x4x128xf32, #tpu.memory_space<vmem>>, vector<1x4x128xf32>
    %20 = vector.shape_cast %19 : vector<1x4x128xf32> to vector<4x128xf32>
    %cst_14 = arith.constant dense<0.000000e+00> : vector<224x128xf32>
    %21 = tpu.matmul %18, %20, %cst_14 {dimension_numbers = #tpu.dot_dimension_numbers<[1], [0], [0], [1], [0, 0, 1, 1], [], []>} : vector<224x4xf32>, vector<4x128xf32>, vector<224x128xf32> -> vector<224x128xf32>
    %22 = arith.addf %17, %21 : vector<224x128xf32>
    %23 = vector.extract_strided_slice %1 {offsets = [17, 0], sizes = [224, 4], strides = [1, 1]} : vector<258x4xf32> to vector<224x4xf32>
    %c4 = arith.constant 4 : index
    %c0_15 = arith.constant 0 : index
    %c0_16 = arith.constant 0 : index
    %24 = vector.load %arg2[%c4, %c0_15, %c0_16] : memref<9x4x128xf32, #tpu.memory_space<vmem>>, vector<1x4x128xf32>
    %25 = vector.shape_cast %24 : vector<1x4x128xf32> to vector<4x128xf32>
    %cst_17 = arith.constant dense<0.000000e+00> : vector<224x128xf32>
    %26 = tpu.matmul %23, %25, %cst_17 {dimension_numbers = #tpu.dot_dimension_numbers<[1], [0], [0], [1], [0, 0, 1, 1], [], []>} : vector<224x4xf32>, vector<4x128xf32>, vector<224x128xf32> -> vector<224x128xf32>
    %27 = arith.addf %22, %26 : vector<224x128xf32>
    %28 = vector.extract_strided_slice %1 {offsets = [18, 0], sizes = [224, 4], strides = [1, 1]} : vector<258x4xf32> to vector<224x4xf32>
    %c5 = arith.constant 5 : index
    %c0_18 = arith.constant 0 : index
    %c0_19 = arith.constant 0 : index
    %29 = vector.load %arg2[%c5, %c0_18, %c0_19] : memref<9x4x128xf32, #tpu.memory_space<vmem>>, vector<1x4x128xf32>
    %30 = vector.shape_cast %29 : vector<1x4x128xf32> to vector<4x128xf32>
    %cst_20 = arith.constant dense<0.000000e+00> : vector<224x128xf32>
    %31 = tpu.matmul %28, %30, %cst_20 {dimension_numbers = #tpu.dot_dimension_numbers<[1], [0], [0], [1], [0, 0, 1, 1], [], []>} : vector<224x4xf32>, vector<4x128xf32>, vector<224x128xf32> -> vector<224x128xf32>
    %32 = arith.addf %27, %31 : vector<224x128xf32>
    %33 = vector.extract_strided_slice %1 {offsets = [32, 0], sizes = [224, 4], strides = [1, 1]} : vector<258x4xf32> to vector<224x4xf32>
    %c6 = arith.constant 6 : index
    %c0_21 = arith.constant 0 : index
    %c0_22 = arith.constant 0 : index
    %34 = vector.load %arg2[%c6, %c0_21, %c0_22] : memref<9x4x128xf32, #tpu.memory_space<vmem>>, vector<1x4x128xf32>
    %35 = vector.shape_cast %34 : vector<1x4x128xf32> to vector<4x128xf32>
    %cst_23 = arith.constant dense<0.000000e+00> : vector<224x128xf32>
    %36 = tpu.matmul %33, %35, %cst_23 {dimension_numbers = #tpu.dot_dimension_numbers<[1], [0], [0], [1], [0, 0, 1, 1], [], []>} : vector<224x4xf32>, vector<4x128xf32>, vector<224x128xf32> -> vector<224x128xf32>
    %37 = arith.addf %32, %36 : vector<224x128xf32>
    %38 = vector.extract_strided_slice %1 {offsets = [33, 0], sizes = [224, 4], strides = [1, 1]} : vector<258x4xf32> to vector<224x4xf32>
    %c7 = arith.constant 7 : index
    %c0_24 = arith.constant 0 : index
    %c0_25 = arith.constant 0 : index
    %39 = vector.load %arg2[%c7, %c0_24, %c0_25] : memref<9x4x128xf32, #tpu.memory_space<vmem>>, vector<1x4x128xf32>
    %40 = vector.shape_cast %39 : vector<1x4x128xf32> to vector<4x128xf32>
    %cst_26 = arith.constant dense<0.000000e+00> : vector<224x128xf32>
    %41 = tpu.matmul %38, %40, %cst_26 {dimension_numbers = #tpu.dot_dimension_numbers<[1], [0], [0], [1], [0, 0, 1, 1], [], []>} : vector<224x4xf32>, vector<4x128xf32>, vector<224x128xf32> -> vector<224x128xf32>
    %42 = arith.addf %37, %41 : vector<224x128xf32>
    %43 = vector.extract_strided_slice %1 {offsets = [34, 0], sizes = [224, 4], strides = [1, 1]} : vector<258x4xf32> to vector<224x4xf32>
    %c8 = arith.constant 8 : index
    %c0_27 = arith.constant 0 : index
    %c0_28 = arith.constant 0 : index
    %44 = vector.load %arg2[%c8, %c0_27, %c0_28] : memref<9x4x128xf32, #tpu.memory_space<vmem>>, vector<1x4x128xf32>
    %45 = vector.shape_cast %44 : vector<1x4x128xf32> to vector<4x128xf32>
    %cst_29 = arith.constant dense<0.000000e+00> : vector<224x128xf32>
    %46 = tpu.matmul %43, %45, %cst_29 {dimension_numbers = #tpu.dot_dimension_numbers<[1], [0], [0], [1], [0, 0, 1, 1], [], []>} : vector<224x4xf32>, vector<4x128xf32>, vector<224x128xf32> -> vector<224x128xf32>
    %47 = arith.addf %42, %46 : vector<224x128xf32>
    %c0_30 = arith.constant 0 : index
    %c0_31 = arith.constant 0 : index
    %c0_32 = arith.constant 0 : index
    %48 = vector.load %arg4[%c0_30, %c0_31, %c0_32] : memref<1x224x128xf32, #tpu.memory_space<vmem>>, vector<1x224x128xf32>
    %49 = vector.shape_cast %48 : vector<1x224x128xf32> to vector<224x128xf32>
    %50 = vector.shape_cast %47 : vector<224x128xf32> to vector<1x224x128xf32>
    tpu.vector_store %arg4[%c0_30, %c0_31, %c0_32], %50 {strides = array<i32>} : memref<1x224x128xf32, #tpu.memory_space<vmem>>, vector<1x224x128xf32>,
    %c0_33 = arith.constant 0 : index
    %c0_34 = arith.constant 0 : index
    %51 = vector.load %arg3[%c0_33, %c0_34] : memref<224x1xf32, #tpu.memory_space<vmem>>, vector<224x1xf32>
    %52 = vector.broadcast %51 : vector<224x1xf32> to vector<224x128xf32>
    %53 = arith.mulf %47, %52 : vector<224x128xf32>
    %cst_35 = arith.constant dense<0.000000e+00> : vector<128xf32>
    %54 = vector.multi_reduction <add>, %53, %cst_35 [0] : vector<224x128xf32> to vector<128xf32>
    %55 = vector.shape_cast %54 : vector<128xf32> to vector<1x128xf32>
    %c0_36 = arith.constant 0 : index
    %c0_37 = arith.constant 0 : index
    %c0_38 = arith.constant 0 : index
    %56 = vector.load %arg5[%c0_36, %c0_37, %c0_38] : memref<1x1x128xf32, #tpu.memory_space<vmem>>, vector<1x1x128xf32>
    %57 = vector.shape_cast %56 : vector<1x1x128xf32> to vector<1x128xf32>
    %58 = vector.shape_cast %55 : vector<1x128xf32> to vector<1x1x128xf32>
    tpu.vector_store %arg5[%c0_36, %c0_37, %c0_38], %58 {strides = array<i32>} : memref<1x1x128xf32, #tpu.memory_space<vmem>>, vector<1x1x128xf32>,
    %59 = arith.mulf %53, %47 : vector<224x128xf32>
    %cst_39 = arith.constant dense<0.000000e+00> : vector<128xf32>
    %60 = vector.multi_reduction <add>, %59, %cst_39 [0] : vector<224x128xf32> to vector<128xf32>
    %61 = vector.shape_cast %60 : vector<128xf32> to vector<1x128xf32>
    %c0_40 = arith.constant 0 : index
    %c0_41 = arith.constant 0 : index
    %c0_42 = arith.constant 0 : index
    %62 = vector.load %arg6[%c0_40, %c0_41, %c0_42] : memref<1x1x128xf32, #tpu.memory_space<vmem>>, vector<1x1x128xf32>
    %63 = vector.shape_cast %62 : vector<1x1x128xf32> to vector<1x128xf32>
    %64 = vector.shape_cast %61 : vector<1x128xf32> to vector<1x1x128xf32>
    tpu.vector_store %arg6[%c0_40, %c0_41, %c0_42], %64 {strides = array<i32>} : memref<1x1x128xf32, #tpu.memory_space<vmem>>, vector<1x1x128xf32>,
    return
  }
  func.func @transform_0(%arg0: i32) -> (i32, i32, i32) {
    %c0_i32 = arith.constant 0 : i32
    %c0_i32_0 = arith.constant 0 : i32
    %c0_i32_1 = arith.constant 0 : i32
    return %arg0, %c0_i32, %c0_i32_0 : i32, i32, i32
  }
  func.func @transform_1(%arg0: i32) -> (i32, i32, i32) {
    %c0_i32 = arith.constant 0 : i32
    %c0_i32_0 = arith.constant 0 : i32
    %c0_i32_1 = arith.constant 0 : i32
    %c0_i32_2 = arith.constant 0 : i32
    return %c0_i32, %c0_i32_0, %c0_i32_1 : i32, i32, i32
  }
  func.func @transform_2(%arg0: i32) -> (i32, i32) {
    %c0_i32 = arith.constant 0 : i32
    %c0_i32_0 = arith.constant 0 : i32
    %c0_i32_1 = arith.constant 0 : i32
    return %c0_i32, %c0_i32_0 : i32, i32
  }
  func.func @transform_3(%arg0: i32) -> (i32, i32, i32) {
    %c0_i32 = arith.constant 0 : i32
    %c0_i32_0 = arith.constant 0 : i32
    %c0_i32_1 = arith.constant 0 : i32
    return %arg0, %c0_i32, %c0_i32_0 : i32, i32, i32
  }
  func.func @transform_4(%arg0: i32) -> (i32, i32, i32) {
    %c0_i32 = arith.constant 0 : i32
    %c0_i32_0 = arith.constant 0 : i32
    %c0_i32_1 = arith.constant 0 : i32
    return %arg0, %c0_i32, %c0_i32_0 : i32, i32, i32
  }
  func.func @transform_5(%arg0: i32) -> (i32, i32, i32) {
    %c0_i32 = arith.constant 0 : i32
    %c0_i32_0 = arith.constant 0 : i32
    %c0_i32_1 = arith.constant 0 : i32
    return %arg0, %c0_i32, %c0_i32_0 : i32, i32, i32
  }
}

</mosaic_0001>

<bundles_post_ra>
// kernel: tpu_custom_call.1
= control target key start
LH: loop header
LB: loop body
LE: loop exit
PB: predicated region body
PF: predicated region fallthrough
CT: control target
= control target key end

     0   :  { %11 = vsyncpa [#allocation3], 0  ;;  %s4085_s0 = inlined_call_operand.vmem [shape: f32[2,258,4], index: 0, kind: input, shape index: {}]   ;;  %s4086_s1 = inlined_call_operand.vmem [shape: f32[9,4,128], index: 1, kind: input, shape index: {}]   ;;  %s4087_s2 = inlined_call_operand.vmem [shape: f32[224,1], index: 2, kind: input, shape index: {}]   ;;  %s4088_s3 = inlined_call_operand.hbm [shape: f32[2,224,128], index: 3, kind: output, shape index: {0}]   ;;  %s4089_s4 = inlined_call_operand.hbm [shape: f32[2,1,128], index: 4, kind: output, shape index: {1}]   ;;  %s4090_s5 = inlined_call_operand.hbm [shape: f32[2,1,128], index: 5, kind: output, shape index: {2}]  }
   0x1   :  { %13 = vsyncpa [#allocation3 + $0x1], 0 }
   0x2   :  { %14 = vsyncpa [#allocation5], 0 }
   0x3   :  { %16 = vsyncpa [#allocation5 + $0x1], 0  ;;  %s2775_s18 = smov 0   ;;  %s2777_s19 = smov 0  }
   0x4   :  { %s2779_s20 = smov 0   ;;  %s2781_s21 = smov 0  }
   0x5 LB: > { %s2796_s22 = sadd.s32 4294967295, %s2740_s21   ;;  %s2265_s23 = sadd.s32 4294967294, %s2740_s21   ;;  %s2740_s21 = sphi %s2781_s21, %s4221_s21   ;;  %s2736_s20 = sphi %s2779_s20, %s4220_s20   ;;  %s2732_s19 = sphi %s2777_s19, %s4219_s19   ;;  %s2728_s18 = sphi %s2775_s18, %s4218_s18  }
   0x6   : > { %s2800_s24 = sadd.s32 1, %s2740_s21   ;;  %s97_s25 = sadd.s32 1, %s2736_s20 }
   0x7   : > { %s94_s26 = ssub.s32 %s2740_s21, %s2800_s24  ;;  %p107_p0 = scmp.ne.s32.totalorder %s2736_s20, %s2732_s19 }
   0x8   : > { %p95_p1 = scmp.eq.s32.totalorder %s94_s26, 0  ;;  %p108_p2 = scmp.eq.s32.totalorder %s2796_s22, 1 }
   0x9   : > { %p113_p3 = scmp.ne.s32.totalorder %s2732_s19, %s2728_s18  ;;  %p114_p4 = scmp.eq.s32.totalorder %s2265_s23, 1 }
   0xa   : > { %s2813_s27 = scalar_select %p95_p1, %s2736_s20, %s97_s25  }
   0xb   : > { %p2815_p5 = por %p108_p2, %p107_p0  ;;  %p2819_p6 = por %p114_p4, %p113_p3 }
   0xc   : > { %p2268_p7 = scmp.ge.s32.totalorder %s2740_s21, 1  ;;  %p198_p8 = scmp.lt.s32.totalorder %s2740_s21, 3 }
   0xe   : > { %p199_p9 = pnand %p2268_p7, %p198_p8 }
  0x10   : > { %202 = sbr.rel (%p199_p9) target bundleno = 700 (0x2bc), region = 32 }
  0x15   : > { %v2270_v0 = vld [vmem:[%s4086_s1 + $0x4] sm:$0xf]  ;;  %vm419_vm0 = vcmask 1043456   ;;  %p234_p10 = scmp.lt.s32.totalorder %s2796_s22, 1  ;;  %v2329_v1 = vld [vmem:[%s4086_s1 + $0x8] sm:$0xf] }
  0x16   : > { %2542 = vmatpush.msk.msra.mxu1 %vm419_vm0, %v2270_v0  ;;  %2543 = vmatpush.msk.msra.mxu2 %vm419_vm0, %v2270_v0  ;;  %v2359_v2 = vld [vmem:[%s4086_s1 + $0xc] sm:$0xf]  ;;  %v272_v3 = vld [vmem:[%s4086_s1] sm:$0xf]  ;;  %v2389_v4 = vld [vmem:[%s4086_s1 + $0x10] sm:$0xf] }
  0x17   : > { %s235_s13 = scalar_select %p234_p10, %s2796_s22, 1  ;;  %2544 = vmatpush.msk.msra.mxu3 %vm419_vm0, %v2270_v0  ;;  %2271 = vmatpush.msk.msra.mxu0 %vm419_vm0, %v2270_v0  ;;  %vm304_vm1 = vcmask 1046528   ;;  %vm362_vm2 = vcmask 31744   ;;  %vm686_vm3 = vcmask 1045504  }
  0x18   : > { %2330 = vmatpush.msk.msrb.mxu2 %vm419_vm0, %v2329_v1  ;;  %2300 = vmatpush.msk.msrb.mxu1 %vm419_vm0, %v272_v3  ;;  %v2479_v3 = vld [vmem:[%s4086_s1 + $0x1c] sm:$0xf]  ;;  %s2638_s15 = scalar_lea.hbm %s4088_s3, 448 }
  0x19   : > { %2360 = vmatpush.msk.msrb.mxu3 %vm419_vm0, %v2359_v2  ;;  %s2546_s16 = smul.u32 264, %s235_s13  ;;  %2390 = vmatpush.msk.msrb.mxu0 %vm419_vm0, %v2389_v4  ;;  %v2449_v2 = vld [vmem:[%s4086_s1 + $0x18] sm:$0xf]  ;;  %v2419_v4 = vld [vmem:[%s4086_s1 + $0x14] sm:$0xf]  ;;  %s3824_s13 = sand.u32 1, %s2732_s19  }
  0x1a   : > { %s2101_s9 = scalar_lea.sflag [#allocation3], %s3824_s13 }
  0x1b   : > { %s2853_s26 = scalar_lea.vmem %s4085_s0, %s2546_s16  ;;  %s2545_s16 = smul.u32 224, %s3824_s13 }
  0x1c   : > { %v2856_v5 = vld [vmem:[%s2853_s26 + $0x38] sm:$0xff]  ;;  %v2859_v6 = vld [vmem:[%s2853_s26 + $0x40] sm:$0xff]  ;;  %v2862_v7 = vld [vmem:[%s2853_s26 + $0x70] sm:$0xff] }
  0x1d   : > { %4132 = vst [vmem:[#allocation9_spill] sm:$0xff] %v2859_v6  ;;  %v318_v8 = vrot.slane %v2856_v5, 1  ;;  %v320_v9 = vrot.slane %v2859_v6, 1  ;;  %v2867_v10 = vld [vmem:[%s2853_s26 + $0x78] sm:$0xff]  ;;  %v332_v11 = vrot.slane %v2862_v7, 1  ;;  %v2871_v12 = vld [vmem:[%s2853_s26 + $0xa8] sm:$0xff] }
  0x1e   : > { %v2874_v13 = vld [vmem:[%s2853_s26 + $0xb0] sm:$0xff]  ;;  %v334_v14 = vrot.slane %v2867_v10, 1  ;;  %v346_v15 = vrot.slane %v2871_v12, 1  ;;  %v2880_v17 = vld [vmem:[%s2853_s26 + $0x48] sm:$0xff]  ;;  %v2883_v18 = vld [vmem:[%s2853_s26] sm:$0xff]  ;;  %s3843_s30 = scalar_lea.vmem [#allocation2], %s2545_s16 }
  0x1f   : > { %v348_v16 = vrot.slane %v2874_v13, 1  ;;  %4133 = vst [vmem:[#allocation10_spill] sm:$0xff] %v2880_v17  ;;  %v2888_v19 = vsel %vm304_vm1, %v318_v8, %v320_v9  ;;  %v2891_v20 = vld [vmem:[%s2853_s26 + $0x80] sm:$0xff]  ;;  %v2894_v21 = vld [vmem:[%s2853_s26 + $0x8] sm:$0xff]  ;;  %v305_v22 = vrot.slane %v2883_v18, 1  ;;  %v2898_v23 = vld [vmem:[%s2853_s26 + $0xb8] sm:$0xff] }
  0x20   : > { %2279 = vmatmul.msk.f32.vlgmr.msra.gmra.mxu1 %vm362_vm2, %v2888_v19  ;;  %v2905_v24 = vsel %vm304_vm1, %v332_v11, %v334_v14  ;;  %v306_v26 = vrot.slane %v2894_v21, 1  ;;  %v322_v27 = vrot.slane %v2880_v17, 1  ;;  %v2919_v28 = vld [vmem:[%s2853_s26 + $0x10] sm:$0xff]  ;;  %v336_v29 = vrot.slane %v2891_v20, 1  ;;  %v2939_v37 = vld [vmem:[%s2853_s26 + $0x88] sm:$0xff]  ;;  %v2942_v38 = vld [vmem:[%s2853_s26 + $0xc0] sm:$0xff] }
  0x21   : > { %4134 = vst [vmem:[#allocation11_spill] sm:$0xff] %v2905_v24  ;;  %v2910_v25 = vsel %vm304_vm1, %v346_v15, %v348_v16  ;;  %2286 = vmatmul.msk.f32.vlgmr.msra.gmra.mxu2 %vm362_vm2, %v2905_v24  ;;  %v350_v31 = vrot.slane %v2898_v23, 1  ;;  %v308_v32 = vrot.slane %v2919_v28, 1  ;;  %v2936_v36 = vld [vmem:[%s2853_s26 + $0x50] sm:$0xff]  ;;  %v2953_v41 = vld [vmem:[%s2853_s26 + $0x18] sm:$0xff]  ;;  %v338_v42 = vrot.slane %v2939_v37, 1  ;;  %2420 = vmatpush.msk.msra.mxu1 %vm419_vm0, %v2419_v4 }
  0x22   : > { %2293 = vmatmul.msk.f32.vlgmr.msra.gmra.mxu3 %vm362_vm2, %v2910_v25  ;;  %v307_v30 = vsel %vm304_vm1, %v305_v22, %v306_v26  ;;  %v2927_v33 = vsel %vm304_vm1, %v320_v9, %v322_v27  ;;  %v2930_v34 = vsel %vm304_vm1, %v334_v14, %v336_v29  ;;  %4137 = vst [vmem:[#allocation14_spill] sm:$0xff] %v2936_v36  ;;  %v324_v40 = vrot.slane %v2936_v36, 1  ;;  %v2969_v48 = vld [vmem:[%s2853_s26 + $0x58] sm:$0xff]  ;;  %v2972_v49 = vld [vmem:[%s2853_s26 + $0x90] sm:$0xff]  ;;  %v2975_v50 = vld [vmem:[%s2853_s26 + $0xc8] sm:$0xff]  ;;  %s2121_s7 = sshll.u32 %s3843_s30, 4  ;;  %s2122_s7 = int_to_ptr.vmem [resolvable:$true] %s2121_s7 }
  0x23   : > { %2272 = vmatmul.msk.f32.vlgmr.msra.gmra.mxu0 %vm362_vm2, %v307_v30  ;;  %4135 = vst [vmem:[#allocation12_spill] sm:$0xff] %v2927_v33  ;;  %v2933_v35 = vsel %vm304_vm1, %v348_v16, %v350_v31  ;;  %v309_v39 = vsel %vm304_vm1, %v306_v26, %v308_v32  ;;  %v352_v43 = vrot.slane %v2942_v38, 1  ;;  %v310_v44 = vrot.slane %v2953_v41, 1  ;;  %v2988_v53 = vld [vmem:[%s2853_s26 + $0x20] sm:$0xff]  ;;  %v3008_v61 = vld [vmem:[%s2853_s26 + $0x98] sm:$0xff]  ;;  %v3011_v62 = vld [vmem:[%s2853_s26 + $0xd0] sm:$0xff]  ;;  %2450 = vmatpush.msk.msra.mxu2 %vm419_vm0, %v2449_v2 }
  0x24   : > { %4136 = vst [vmem:[#allocation13_spill] sm:$0xff] %v2930_v34  ;;  %v2960_v45 = vsel %vm304_vm1, %v322_v27, %v324_v40  ;;  %v2963_v46 = vsel %vm304_vm1, %v336_v29, %v338_v42  ;;  %v326_v52 = vrot.slane %v2969_v48, 1  ;;  %v340_v54 = vrot.slane %v2972_v49, 1  ;;  %v2999_v58 = vld [vmem:[%s2853_s26 + $0x60] sm:$0xff]  ;;  %v3020_v1 = vld [vmem:[%s2853_s26 + $0x28] sm:$0xff]  ;;  %2480 = vmatpush.msk.msra.mxu3 %vm419_vm0, %v2479_v3 }
  0x25   : > { %4138 = vst [vmem:[#allocation15_spill] sm:$0xff] %v2960_v45  ;;  %v2966_v47 = vsel %vm304_vm1, %v350_v31, %v352_v43  ;;  %v2980_v51 = vsel %vm304_vm1, %v308_v32, %v310_v44  ;;  %v354_v55 = vrot.slane %v2975_v50, 1  ;;  %v312_v56 = vrot.slane %v2988_v53, 1  ;;  %v3053_v29 = vld [vmem:[%s2853_s26 + $0x68] sm:$0xff]  ;;  %v3056_v30 = vld [vmem:[%s2853_s26 + $0xa0] sm:$0xff]  ;;  %v3059_v31 = vld [vmem:[%s2853_s26 + $0xd8] sm:$0xff] }
  0x26   : > { %4139 = vst [vmem:[#allocation16_spill] sm:$0xff] %v2963_v46  ;;  %v2996_v57 = vsel %vm304_vm1, %v324_v40, %v326_v52  ;;  %v3002_v59 = vsel %vm304_vm1, %v338_v42, %v340_v54  ;;  %v328_v63 = vrot.slane %v2999_v58, 1  ;;  %v342_v9 = vrot.slane %v3008_v61, 1  ;;  %v3072_v40 = vld [vmem:[%s2853_s26 + $0x30] sm:$0xff]  ;;  %v2509_v42 = vld [vmem:[%s4086_s1 + $0x20] sm:$0xf] }
  0x27   : > { %4140 = vst [vmem:[#allocation17_spill] sm:$0xff] %v2969_v48  ;;  %v3005_v60 = vsel %vm304_vm1, %v352_v43, %v354_v55  ;;  %v3017_v0 = vsel %vm304_vm1, %v310_v44, %v312_v56  ;;  %v356_v14 = vrot.slane %v3011_v62, 1  ;;  %v314_v16 = vrot.slane %v3020_v1, 1  ;;  %2510 = vmatpush.msk.msra.mxu0 %vm419_vm0, %v2509_v42  ;;  %v3093_v2 = vld [vmem:[%s2853_s26 + $0xe0] sm:$0xff] }
  0x28   : > { %2280 = vmatmul.msk.f32.gmra.mxu1 %vm362_vm2, %v2927_v33  ;;  %4141 = vst [vmem:[#allocation18_spill] sm:$0xff] %v2996_v57  ;;  %v3044_v22 = vsel %vm304_vm1, %v326_v52, %v328_v63  ;;  %v3047_v26 = vsel %vm304_vm1, %v340_v54, %v342_v9  ;;  %v344_v43 = vrot.slane %v3056_v30, 1  ;;  %v358_v44 = vrot.slane %v3059_v31, 1 }
  0x29   : > { %2287 = vmatmul.msk.f32.gmra.mxu2 %vm362_vm2, %v2930_v34  ;;  %4142 = vst [vmem:[#allocation19_spill] sm:$0xff] %v2999_v58  ;;  %v3050_v27 = vsel %vm304_vm1, %v354_v55, %v356_v14  ;;  %v3064_v32 = vsel %vm304_vm1, %v312_v56, %v314_v16  ;;  %v316_v52 = vrot.slane %v3072_v40, 1 }
  0x2a   : > { %2294 = vmatmul.msk.f32.gmra.mxu3 %vm362_vm2, %v2933_v35  ;;  %4143 = vst [vmem:[#allocation20_spill] sm:$0xff] %v3002_v59  ;;  %v3087_v55 = vsel %vm304_vm1, %v342_v9, %v344_v43  ;;  %v3090_v56 = vsel %vm304_vm1, %v356_v14, %v358_v44  ;;  %v3115_v9 = vsel %vm304_vm1, %v344_v43, %v346_v15  ;;  %v688_v15 = vrot.slane %v2894_v21, 2 }
  0x2b   : > { %2273 = vmatmul.msk.f32.gmra.mxu0 %vm362_vm2, %v309_v39  ;;  %4144 = vst [vmem:[#allocation21_spill] sm:$0xff] %v3044_v22  ;;  %v330_v39 = vrot.slane %v3053_v29, 1  ;;  %v3098_v3 = vsel %vm304_vm1, %v314_v16, %v316_v52  ;;  %v3127_v16 = vsel %vm304_vm1, %v316_v52, %v318_v8  ;;  %v690_v8 = vrot.slane %v2919_v28, 2 }
  0x2c   : > { %4145 = vst [vmem:[#allocation22_spill] sm:$0xff] %v3053_v29  ;;  %v700_v52 = vrot.slane %v2856_v5, 2 }
  0x2d   : > { %v3084_v54 = vsel %vm304_vm1, %v328_v63, %v330_v39  ;;  %v4091_v63 = vrot.slane %v3093_v2, 1  ;;  %v3110_v4 = vsel %vm304_vm1, %v330_v39, %v332_v11  ;;  %v687_v11 = vrot.slane %v2883_v18, 2 }
  0x2e   : > { %4146 = vst [vmem:[#allocation23_spill] sm:$0xff] %v3084_v54  ;;  %v691_v42 = vsel %vm686_vm3, %v688_v15, %v690_v8 }
  0x2f   : > { %4147 = vst [vmem:[#allocation24_spill] sm:$0xff] %v3110_v4  ;;  %v3120_v14 = vsel %vm304_vm1, %v358_v44, %v4091_v63  ;;  %v689_v39 = vsel %vm686_vm3, %v687_v11, %v688_v15  ;;  %v702_v15 = vrot.slane %v2859_v6, 2 }
  0x30   : > { %2281 = vmatmul.msk.f32.gmra.mxu1 %vm362_vm2, %v2960_v45  ;;  %4148 = vst [vmem:[#allocation25_spill] sm:$0xff] %v3120_v14 }
  0x31   : > { %2288 = vmatmul.msk.f32.gmra.mxu2 %vm362_vm2, %v2963_v46 }
  0x32   : > { %2295 = vmatmul.msk.f32.gmra.mxu3 %vm362_vm2, %v2966_v47 }
  0x33   : > { %2274 = vmatmul.msk.f32.gmra.mxu0 %vm362_vm2, %v2980_v51 }
  0x38   : > { %2282 = vmatmul.msk.f32.gmra.mxu1 %vm362_vm2, %v2996_v57 }
  0x39   : > { %2289 = vmatmul.msk.f32.gmra.mxu2 %vm362_vm2, %v3002_v59 }
  0x3a   : > { %2296 = vmatmul.msk.f32.gmra.mxu3 %vm362_vm2, %v3005_v60 }
  0x3b   : > { %2275 = vmatmul.msk.f32.gmra.mxu0 %vm362_vm2, %v3017_v0 }
  0x40   : > { %2283 = vmatmul.msk.f32.gmra.mxu1 %vm362_vm2, %v3044_v22 }
  0x41   : > { %2290 = vmatmul.msk.f32.gmra.mxu2 %vm362_vm2, %v3047_v26 }
  0x42   : > { %2297 = vmatmul.msk.f32.gmra.mxu3 %vm362_vm2, %v3050_v27 }
  0x43   : > { %2276 = vmatmul.msk.f32.gmra.mxu0 %vm362_vm2, %v3064_v32 }
  0x48   : > { %2284 = vmatmul.msk.f32.gmra.mxu1 %vm362_vm2, %v3084_v54 }
  0x49   : > { %2291 = vmatmul.msk.f32.gmra.mxu2 %vm362_vm2, %v3087_v55 }
  0x4a   : > { %2298 = vmatmul.msk.f32.gmra.mxu3 %vm362_vm2, %v3090_v56 }
  0x4b   : > { %2277 = vmatmul.msk.f32.gmra.mxu0 %vm362_vm2, %v3098_v3 }
  0x50   : > { %2285 = vmatmul.msk.f32.gmra.mxu1 %vm362_vm2, %v3110_v4 }
  0x51   : > { %2292 = vmatmul.msk.f32.gmra.mxu2 %vm362_vm2, %v3115_v9 }
  0x52   : > { %2299 = vmatmul.msk.f32.gmra.mxu3 %vm362_vm2, %v3120_v14 }
  0x53   : > { %2278 = vmatmul.msk.f32.gmra.mxu0 %vm362_vm2, %v3127_v16 }
  0x58   : > { %2301 = vmatmul.msk.f32.vlgmr.msrb.gmra.mxu1 %vm362_vm2, %v2883_v18  ;;  %v692_v18 = vrot.slane %v2953_v41, 2 }
  0x59   : > { %2331 = vmatmul.msk.f32.vlgmr.msrb.gmra.mxu2 %vm362_vm2, %v689_v39  ;;  %v3216_v39 = vsel %vm686_vm3, %v700_v52, %v702_v15 }
  0x5a   : > { %2361 = vmatmul.msk.f32.vlgmr.msrb.gmra.mxu3 %vm362_vm2, %v2919_v28  ;;  %v3156_v43 = vsel %vm686_vm3, %v690_v8, %v692_v18  ;;  %4149 = vst [vmem:[#allocation26_spill] sm:$0xff] %v3216_v39  ;;  %v704_v8 = vrot.slane %v2880_v17, 2 }
  0x5b   : > { %2391 = vmatmul.msk.f32.vlgmr.msrb.gmra.mxu0 %vm362_vm2, %v2980_v51 }
  0x60   : > { %2302 = vmatmul.msk.f32.gmra.mxu1 %vm362_vm2, %v2894_v21  ;;  %v694_v21 = vrot.slane %v2988_v53, 2 }
  0x61   : > { %2332 = vmatmul.msk.f32.gmra.mxu2 %vm362_vm2, %v691_v42  ;;  %v3228_v42 = vsel %vm686_vm3, %v702_v15, %v704_v8 }
  0x62   : > { %2362 = vmatmul.msk.f32.gmra.mxu3 %vm362_vm2, %v2953_v41  ;;  %v3168_v51 = vsel %vm686_vm3, %v692_v18, %v694_v21  ;;  %4150 = vst [vmem:[#allocation27_spill] sm:$0xff] %v3228_v42  ;;  %v706_v18 = vrot.slane %v2936_v36, 2 }
  0x63   : > { %2392 = vmatmul.msk.f32.gmra.mxu0 %vm362_vm2, %v3017_v0 }
  0x68   : > { %2303 = vmatmul.msk.f32.gmra.mxu1 %vm362_vm2, %v2919_v28  ;;  %v696_v28 = vrot.slane %v3020_v1, 2 }
  0x69   : > { %2333 = vmatmul.msk.f32.gmra.mxu2 %vm362_vm2, %v3156_v43 }
  0x6a   : > { %2363 = vmatmul.msk.f32.gmra.mxu3 %vm362_vm2, %v2988_v53  ;;  %v3180_v0 = vsel %vm686_vm3, %v694_v21, %v696_v28 }
  0x6b   : > { %2393 = vmatmul.msk.f32.gmra.mxu0 %vm362_vm2, %v3064_v32 }
  0x70   : > { %2304 = vmatmul.msk.f32.gmra.mxu1 %vm362_vm2, %v2953_v41  ;;  %v698_v41 = vrot.slane %v3072_v40, 2 }
  0x71   : > { %2334 = vmatmul.msk.f32.gmra.mxu2 %vm362_vm2, %v3168_v51 }
  0x72   : > { %2364 = vmatmul.msk.f32.gmra.mxu3 %vm362_vm2, %v3020_v1  ;;  %v3192_v44 = vsel %vm686_vm3, %v696_v28, %v698_v41  ;;  %v3204_v11 = vsel %vm686_vm3, %v698_v41, %v700_v52  ;;  %v3242_v28 = vsel %vm686_vm3, %v704_v8, %v706_v18  ;;  %v708_v52 = vrot.slane %v2969_v48, 2 }
  0x73   : > { %2394 = vmatmul.msk.f32.gmra.mxu0 %vm362_vm2, %v3098_v3  ;;  %4151 = vst [vmem:[#allocation28_spill] sm:$0xff] %v3242_v28 }
  0x78   : > { %2305 = vmatmul.msk.f32.gmra.mxu1 %vm362_vm2, %v2988_v53 }
  0x79   : > { %2335 = vmatmul.msk.f32.gmra.mxu2 %vm362_vm2, %v3180_v0 }
  0x7a   : > { %2365 = vmatmul.msk.f32.gmra.mxu3 %vm362_vm2, %v3072_v40 }
  0x7b   : > { %2395 = vmatmul.msk.f32.gmra.mxu0 %vm362_vm2, %v3127_v16 }
  0x80   : > { %2306 = vmatmul.msk.f32.gmra.mxu1 %vm362_vm2, %v3020_v1 }
  0x81   : > { %2336 = vmatmul.msk.f32.gmra.mxu2 %vm362_vm2, %v3192_v44 }
  0x82   : > { %2366 = vmatmul.msk.f32.gmra.mxu3 %vm362_vm2, %v2856_v5 }
  0x83   : > { %2396 = vmatmul.msk.f32.gmra.mxu0 %vm362_vm2, %v2888_v19 }
  0x88   : > { %2307 = vmatmul.msk.f32.gmra.mxu1 %vm362_vm2, %v3072_v40 }
  0x89   : > { %2337 = vmatmul.msk.f32.gmra.mxu2 %vm362_vm2, %v3204_v11 }
  0x8a   : > { %2367 = vmatmul.msk.f32.gmra.mxu3 %vm362_vm2, %v2859_v6 }
  0x8b   : > { %2397 = vmatmul.msk.f32.gmra.mxu0 %vm362_vm2, %v2927_v33 }
  0x90   : > { %2308 = vmatmul.msk.f32.gmra.mxu1 %vm362_vm2, %v2856_v5 }
  0x91   : > { %2338 = vmatmul.msk.f32.gmra.mxu2 %vm362_vm2, %v3216_v39 }
  0x92   : > { %2368 = vmatmul.msk.f32.gmra.mxu3 %vm362_vm2, %v2880_v17 }
  0x93   : > { %2398 = vmatmul.msk.f32.gmra.mxu0 %vm362_vm2, %v2960_v45 }
  0x98   : > { %2309 = vmatmul.msk.f32.gmra.mxu1 %vm362_vm2, %v2859_v6 }
  0x99   : > { %2339 = vmatmul.msk.f32.gmra.mxu2 %vm362_vm2, %v3228_v42 }
  0x9a   : > { %2369 = vmatmul.msk.f32.gmra.mxu3 %vm362_vm2, %v2936_v36 }
  0x9b   : > { %2399 = vmatmul.msk.f32.gmra.mxu0 %vm362_vm2, %v2996_v57  ;;  %v3262_v57 = vsel %vm686_vm3, %v706_v18, %v708_v52 }
  0x9c   : > { %4153 = vst [vmem:[#allocation30_spill] sm:$0xff] %v3262_v57 }
  0x9d   : > { %v3239_v21 = vpop.f32.mrf.mxu1 }
  0xa0   : > { %2310 = vmatmul.msk.f32.gmra.mxu1 %vm362_vm2, %v2880_v17  ;;  %v3246_v41 = vpop.f32.mrf.mxu0 }
  0xa1   : > { %2340 = vmatmul.msk.f32.gmra.mxu2 %vm362_vm2, %v3242_v28 }
  0xa2   : > { %2370 = vmatmul.msk.f32.gmra.mxu3 %vm362_vm2, %v2969_v48 }
  0xa3   : > { %2400 = vmatmul.msk.f32.gmra.mxu0 %vm362_vm2, %v3044_v22  ;;  %v710_v22 = vrot.slane %v2999_v58, 2 }
  0xa4   : > { %v3255_v15 = vpop.f32.mrf.mxu2 }
  0xa5   : > { %v3257_v8 = vpop.f32.mrf.mxu3  ;;  %v3259_v63 = vpop.f32.mrf.mxu1 }
  0xa6   : > { %4152 = vst [vmem:[#allocation29_spill] sm:$0xff] %v3257_v8 }
  0xa8   : > { %2311 = vmatmul.msk.f32.gmra.mxu1 %vm362_vm2, %v2936_v36  ;;  %v3266_v28 = vpop.f32.mrf.mxu0  ;;  %v3282_v36 = vsel %vm686_vm3, %v708_v52, %v710_v22 }
  0xa9   : > { %2341 = vmatmul.msk.f32.gmra.mxu2 %vm362_vm2, %v3262_v57  ;;  %4155 = vst [vmem:[#allocation32_spill] sm:$0xff] %v3282_v36 }
  0xaa   : > { %2371 = vmatmul.msk.f32.gmra.mxu3 %vm362_vm2, %v2999_v58 }
  0xab   : > { %2401 = vmatmul.msk.f32.gmra.mxu0 %vm362_vm2, %v3084_v54  ;;  %v712_v54 = vrot.slane %v3053_v29, 2 }
  0xac   : > { %v3275_v8 = vpop.f32.mrf.mxu2 }
  0xad   : > { %v3277_v18 = vpop.f32.mrf.mxu3  ;;  %v3279_v45 = vpop.f32.mrf.mxu1 }
  0xae   : > { %4154 = vst [vmem:[#allocation31_spill] sm:$0xff] %v3277_v18 }
  0xb0   : > { %2312 = vmatmul.msk.f32.gmra.mxu1 %vm362_vm2, %v2969_v48  ;;  %v3286_v57 = vpop.f32.mrf.mxu0  ;;  %v3302_v48 = vsel %vm686_vm3, %v710_v22, %v712_v54 }
  0xb1   : > { %2342 = vmatmul.msk.f32.gmra.mxu2 %vm362_vm2, %v3282_v36  ;;  %4158 = vst [vmem:[#allocation35_spill] sm:$0xff] %v3302_v48 }
  0xb2   : > { %2372 = vmatmul.msk.f32.gmra.mxu3 %vm362_vm2, %v3053_v29 }
  0xb3   : > { %2402 = vmatmul.msk.f32.gmra.mxu0 %vm362_vm2, %v3110_v4  ;;  %v714_v4 = vrot.slane %v2862_v7, 2 }
  0xb4   : > { %v3295_v18 = vpop.f32.mrf.mxu2 }
  0xb5   : > { %4156 = vst [vmem:[#allocation33_spill] sm:$0xff] %v3295_v18  ;;  %v3297_v52 = vpop.f32.mrf.mxu3  ;;  %v3299_v17 = vpop.f32.mrf.mxu1 }
  0xb6   : > { %4157 = vst [vmem:[#allocation34_spill] sm:$0xff] %v3297_v52 }
  0xb8   : > { %2313 = vmatmul.msk.f32.gmra.mxu1 %vm362_vm2, %v2999_v58  ;;  %v3306_v36 = vpop.f32.mrf.mxu0  ;;  %v3322_v58 = vsel %vm686_vm3, %v712_v54, %v714_v4 }
  0xb9   : > { %2343 = vmatmul.msk.f32.gmra.mxu2 %vm362_vm2, %v3302_v48  ;;  %4161 = vst [vmem:[#allocation38_spill] sm:$0xff] %v3322_v58 }
  0xba   : > { %2373 = vmatmul.msk.f32.gmra.mxu3 %vm362_vm2, %v2862_v7 }
  0xbb   : > { %2403 = vmatmul.msk.f32.gmra.mxu0 %vm362_vm2, %v2905_v24  ;;  %v716_v24 = vrot.slane %v2867_v10, 2 }
  0xbc   : > { %v3315_v52 = vpop.f32.mrf.mxu2 }
  0xbd   : > { %4159 = vst [vmem:[#allocation36_spill] sm:$0xff] %v3315_v52  ;;  %v3317_v22 = vpop.f32.mrf.mxu3  ;;  %v3319_v42 = vpop.f32.mrf.mxu1 }
  0xbe   : > { %4160 = vst [vmem:[#allocation37_spill] sm:$0xff] %v3317_v22 }
  0xc0   : > { %2314 = vmatmul.msk.f32.gmra.mxu1 %vm362_vm2, %v3053_v29  ;;  %v3326_v48 = vpop.f32.mrf.mxu0  ;;  %v3342_v29 = vsel %vm686_vm3, %v714_v4, %v716_v24 }
  0xc1   : > { %2344 = vmatmul.msk.f32.gmra.mxu2 %vm362_vm2, %v3322_v58  ;;  %4164 = vst [vmem:[#allocation41_spill] sm:$0xff] %v3342_v29 }
  0xc2   : > { %2374 = vmatmul.msk.f32.gmra.mxu3 %vm362_vm2, %v2867_v10 }
  0xc3   : > { %2404 = vmatmul.msk.f32.gmra.mxu0 %vm362_vm2, %v2930_v34  ;;  %v718_v34 = vrot.slane %v2891_v20, 2 }
  0xc4   : > { %v3335_v22 = vpop.f32.mrf.mxu2 }
  0xc5   : > { %4162 = vst [vmem:[#allocation39_spill] sm:$0xff] %v3335_v22  ;;  %v3337_v54 = vpop.f32.mrf.mxu3  ;;  %v3339_v52 = vpop.f32.mrf.mxu1 }
  0xc6   : > { %4163 = vst [vmem:[#allocation40_spill] sm:$0xff] %v3337_v54 }
  0xc8   : > { %2315 = vmatmul.msk.f32.gmra.mxu1 %vm362_vm2, %v2862_v7  ;;  %v3346_v58 = vpop.f32.mrf.mxu0  ;;  %v3362_v7 = vsel %vm686_vm3, %v716_v24, %v718_v34 }
  0xc9   : > { %2345 = vmatmul.msk.f32.gmra.mxu2 %vm362_vm2, %v3342_v29  ;;  %4167 = vst [vmem:[#allocation44_spill] sm:$0xff] %v3362_v7 }
  0xca   : > { %2375 = vmatmul.msk.f32.gmra.mxu3 %vm362_vm2, %v2891_v20 }
  0xcb   : > { %2405 = vmatmul.msk.f32.gmra.mxu0 %vm362_vm2, %v2963_v46  ;;  %v720_v46 = vrot.slane %v2939_v37, 2 }
  0xcc   : > { %v3355_v54 = vpop.f32.mrf.mxu2 }
  0xcd   : > { %4165 = vst [vmem:[#allocation42_spill] sm:$0xff] %v3355_v54  ;;  %v3357_v4 = vpop.f32.mrf.mxu3  ;;  %v3359_v22 = vpop.f32.mrf.mxu1 }
  0xce   : > { %4166 = vst [vmem:[#allocation43_spill] sm:$0xff] %v3357_v4 }
  0xd0   : > { %2316 = vmatmul.msk.f32.gmra.mxu1 %vm362_vm2, %v2867_v10  ;;  %v3366_v29 = vpop.f32.mrf.mxu0  ;;  %v3380_v10 = vsel %vm686_vm3, %v718_v34, %v720_v46 }
  0xd1   : > { %2346 = vmatmul.msk.f32.gmra.mxu2 %vm362_vm2, %v3362_v7  ;;  %4170 = vst [vmem:[#allocation47_spill] sm:$0xff] %v3380_v10 }
  0xd2   : > { %2376 = vmatmul.msk.f32.gmra.mxu3 %vm362_vm2, %v2939_v37 }
  0xd3   : > { %2406 = vmatmul.msk.f32.gmra.mxu0 %vm362_vm2, %v3002_v59  ;;  %v722_v59 = vrot.slane %v2972_v49, 2 }
  0xd4   : > { %v3375_v4 = vpop.f32.mrf.mxu2 }
  0xd5   : > { %4168 = vst [vmem:[#allocation45_spill] sm:$0xff] %v3375_v4  ;;  %v3377_v24 = vpop.f32.mrf.mxu3  ;;  %v600_v54 = vpop.f32.mrf.mxu1 }
  0xd6   : > { %4169 = vst [vmem:[#allocation46_spill] sm:$0xff] %v3377_v24  ;;  %v601_v4 = vadd.f32 %v600_v54, %v3246_v41  ;;  %v724_v41 = vrot.slane %v3008_v61, 2 }
  0xd8   : > { %2317 = vmatmul.msk.f32.gmra.mxu1 %vm362_vm2, %v2891_v20  ;;  %v1102_v7 = vpop.f32.mrf.mxu0  ;;  %v3393_v20 = vsel %vm686_vm3, %v720_v46, %v722_v59 }
  0xd9   : > { %2347 = vmatmul.msk.f32.gmra.mxu2 %vm362_vm2, %v3380_v10 }
  0xda   : > { %2377 = vmatmul.msk.f32.gmra.mxu3 %vm362_vm2, %v2972_v49 }
  0xdb   : > { %2407 = vmatmul.msk.f32.gmra.mxu0 %vm362_vm2, %v3047_v26 }
  0xdc   : > { %v820_v24 = vpop.f32.mrf.mxu2 }
  0xdd   : > { %v959_v34 = vpop.f32.mrf.mxu3  ;;  %v904_v18 = vadd.f32 %v820_v24, %v601_v4  ;;  %v603_v33 = vpop.f32.mrf.mxu1 }
  0xde   : > { %v604_v54 = vadd.f32 %v603_v33, %v3266_v28  ;;  %v726_v33 = vrot.slane %v3056_v30, 2 }
  0xdf   : > { %v1043_v6 = vadd.f32 %v959_v34, %v904_v18 }
  0xe0   : > { %2318 = vmatmul.msk.f32.gmra.mxu1 %vm362_vm2, %v2939_v37  ;;  %v1105_v10 = vpop.f32.mrf.mxu0 }
  0xe1   : > { %v3397_v39 = vadd.f32 %v1102_v7, %v1043_v6  ;;  %2348 = vmatmul.msk.f32.gmra.mxu2 %vm362_vm2, %v3393_v20  ;;  %v3408_v6 = vsel %vm686_vm3, %v722_v59, %v724_v41 }
  0xe2   : > { %2378 = vmatmul.msk.f32.gmra.mxu3 %vm362_vm2, %v3008_v61 }
  0xe3   : > { %2408 = vmatmul.msk.f32.gmra.mxu0 %vm362_vm2, %v3087_v55 }
  0xe4   : > { %v823_v46 = vpop.f32.mrf.mxu2 }
  0xe5   : > { %v962_v18 = vpop.f32.mrf.mxu3  ;;  %v905_v4 = vadd.f32 %v823_v46, %v604_v54  ;;  %v606_v37 = vpop.f32.mrf.mxu1 }
  0xe6   : > { %v607_v28 = vadd.f32 %v606_v37, %v3286_v57  ;;  %v728_v57 = vrot.slane %v2871_v12, 2 }
  0xe7   : > { %v1044_v7 = vadd.f32 %v962_v18, %v905_v4 }
  0xe8   : > { %2319 = vmatmul.msk.f32.gmra.mxu1 %vm362_vm2, %v2972_v49  ;;  %v1108_v24 = vpop.f32.mrf.mxu0 }
  0xe9   : > { %v3412_v34 = vadd.f32 %v1105_v10, %v1044_v7  ;;  %2349 = vmatmul.msk.f32.gmra.mxu2 %vm362_vm2, %v3408_v6  ;;  %v3423_v10 = vsel %vm686_vm3, %v724_v41, %v726_v33 }
  0xea   : > { %2379 = vmatmul.msk.f32.gmra.mxu3 %vm362_vm2, %v3056_v30 }
  0xeb   : > { %2409 = vmatmul.msk.f32.gmra.mxu0 %vm362_vm2, %v3115_v9 }
  0xec   : > { %v826_v59 = vpop.f32.mrf.mxu2 }
  0xed   : > { %v965_v54 = vpop.f32.mrf.mxu3  ;;  %v906_v46 = vadd.f32 %v826_v59, %v607_v28  ;;  %v609_v49 = vpop.f32.mrf.mxu1 }
  0xee   : > { %v610_v37 = vadd.f32 %v609_v49, %v3306_v36  ;;  %v730_v36 = vrot.slane %v2874_v13, 2 }
  0xef   : > { %v1045_v18 = vadd.f32 %v965_v54, %v906_v46 }
  0xf0   : > { %2320 = vmatmul.msk.f32.gmra.mxu1 %vm362_vm2, %v3008_v61  ;;  %v1111_v4 = vpop.f32.mrf.mxu0 }
  0xf1   : > { %v3427_v7 = vadd.f32 %v1108_v24, %v1045_v18  ;;  %2350 = vmatmul.msk.f32.gmra.mxu2 %vm362_vm2, %v3423_v10  ;;  %v3438_v24 = vsel %vm686_vm3, %v726_v33, %v728_v57 }
  0xf2   : > { %2380 = vmatmul.msk.f32.gmra.mxu3 %vm362_vm2, %v2871_v12 }
  0xf3   : > { %2410 = vmatmul.msk.f32.gmra.mxu0 %vm362_vm2, %v2910_v25 }
  0xf4   : > { %v829_v41 = vpop.f32.mrf.mxu2 }
  0xf5   : > { %v968_v28 = vpop.f32.mrf.mxu3  ;;  %v907_v59 = vadd.f32 %v829_v41, %v610_v37  ;;  %v612_v61 = vpop.f32.mrf.mxu1 }
  0xf6   : > { %v613_v49 = vadd.f32 %v612_v61, %v3326_v48  ;;  %v732_v48 = vrot.slane %v2898_v23, 2 }
  0xf7   : > { %v1046_v54 = vadd.f32 %v968_v28, %v907_v59 }
  0xf8   : > { %2321 = vmatmul.msk.f32.gmra.mxu1 %vm362_vm2, %v3056_v30  ;;  %v1114_v46 = vpop.f32.mrf.mxu0 }
  0xf9   : > { %v3442_v18 = vadd.f32 %v1111_v4, %v1046_v54  ;;  %2351 = vmatmul.msk.f32.gmra.mxu2 %vm362_vm2, %v3438_v24  ;;  %v3453_v4 = vsel %vm686_vm3, %v728_v57, %v730_v36 }
  0xfa   : > { %2381 = vmatmul.msk.f32.gmra.mxu3 %vm362_vm2, %v2874_v13 }
  0xfb   : > { %2411 = vmatmul.msk.f32.gmra.mxu0 %vm362_vm2, %v2933_v35 }
  0xfc   : > { %v832_v33 = vpop.f32.mrf.mxu2 }
  0xfd   : > { %v971_v37 = vpop.f32.mrf.mxu3  ;;  %v908_v41 = vadd.f32 %v832_v33, %v613_v49  ;;  %v615_v30 = vpop.f32.mrf.mxu1 }
  0xfe   : > { %v616_v61 = vadd.f32 %v615_v30, %v3346_v58  ;;  %v734_v58 = vrot.slane %v2942_v38, 2 }
  0xff   : > { %v1047_v28 = vadd.f32 %v971_v37, %v908_v41 }
 0x100   : > { %2322 = vmatmul.msk.f32.gmra.mxu1 %vm362_vm2, %v2871_v12  ;;  %v1117_v59 = vpop.f32.mrf.mxu0 }
 0x101   : > { %v3457_v54 = vadd.f32 %v1114_v46, %v1047_v28  ;;  %2352 = vmatmul.msk.f32.gmra.mxu2 %vm362_vm2, %v3453_v4  ;;  %v3468_v46 = vsel %vm686_vm3, %v730_v36, %v732_v48 }
 0x102   : > { %2382 = vmatmul.msk.f32.gmra.mxu3 %vm362_vm2, %v2898_v23 }
 0x103   : > { %2412 = vmatmul.msk.f32.gmra.mxu0 %vm362_vm2, %v2966_v47 }
 0x104   : > { %v835_v57 = vpop.f32.mrf.mxu2 }
 0x105   : > { %v974_v49 = vpop.f32.mrf.mxu3  ;;  %v909_v33 = vadd.f32 %v835_v57, %v616_v61  ;;  %v618_v12 = vpop.f32.mrf.mxu1 }
 0x106   : > { %v619_v30 = vadd.f32 %v618_v12, %v3366_v29  ;;  %v736_v29 = vrot.slane %v2975_v50, 2 }
 0x107   : > { %v1048_v37 = vadd.f32 %v974_v49, %v909_v33 }
 0x108   : > { %2323 = vmatmul.msk.f32.gmra.mxu1 %vm362_vm2, %v2874_v13  ;;  %v1120_v41 = vpop.f32.mrf.mxu0 }
 0x109   : > { %v3472_v28 = vadd.f32 %v1117_v59, %v1048_v37  ;;  %2353 = vmatmul.msk.f32.gmra.mxu2 %vm362_vm2, %v3468_v46  ;;  %v3483_v59 = vsel %vm686_vm3, %v732_v48, %v734_v58 }
 0x10a   : > { %2383 = vmatmul.msk.f32.gmra.mxu3 %vm362_vm2, %v2942_v38 }
 0x10b   : > { %2413 = vmatmul.msk.f32.gmra.mxu0 %vm362_vm2, %v3005_v60 }
 0x10c   : > { %v838_v36 = vpop.f32.mrf.mxu2 }
 0x10d   : > { %v977_v61 = vpop.f32.mrf.mxu3  ;;  %v910_v57 = vadd.f32 %v838_v36, %v619_v30  ;;  %v621_v13 = vpop.f32.mrf.mxu1 }
 0x10e   : > { %v622_v12 = vadd.f32 %v621_v13, %v3239_v21  ;;  %v738_v21 = vrot.slane %v3011_v62, 2 }
 0x10f   : > { %v1049_v49 = vadd.f32 %v977_v61, %v910_v57 }
 0x110   : > { %2324 = vmatmul.msk.f32.gmra.mxu1 %vm362_vm2, %v2898_v23  ;;  %v1123_v33 = vpop.f32.mrf.mxu0 }
 0x111   : > { %v3487_v37 = vadd.f32 %v1120_v41, %v1049_v49  ;;  %2354 = vmatmul.msk.f32.gmra.mxu2 %vm362_vm2, %v3483_v59  ;;  %v3498_v41 = vsel %vm686_vm3, %v734_v58, %v736_v29 }
 0x112   : > { %2384 = vmatmul.msk.f32.gmra.mxu3 %vm362_vm2, %v2975_v50 }
 0x113   : > { %2414 = vmatmul.msk.f32.gmra.mxu0 %vm362_vm2, %v3050_v27 }
 0x114   : > { %v841_v48 = vpop.f32.mrf.mxu2 }
 0x115   : > { %v980_v30 = vpop.f32.mrf.mxu3  ;;  %v911_v36 = vadd.f32 %v841_v48, %v622_v12  ;;  %v624_v23 = vpop.f32.mrf.mxu1 }
 0x116   : > { %v625_v13 = vadd.f32 %v624_v23, %v3259_v63  ;;  %v3524_v63 = vld [vmem:[%s2853_s26 + $0xe8] sm:$0xff]  ;;  %v740_v23 = vrot.slane %v3059_v31, 2 }
 0x117   : > { %v1050_v61 = vadd.f32 %v980_v30, %v911_v36 }
 0x118   : > { %2325 = vmatmul.msk.f32.gmra.mxu1 %vm362_vm2, %v2942_v38  ;;  %v1126_v57 = vpop.f32.mrf.mxu0 }
 0x119   : > { %v3502_v49 = vadd.f32 %v1123_v33, %v1050_v61  ;;  %2355 = vmatmul.msk.f32.gmra.mxu2 %vm362_vm2, %v3498_v41  ;;  %v3513_v33 = vsel %vm686_vm3, %v736_v29, %v738_v21 }
 0x11a   : > { %2385 = vmatmul.msk.f32.gmra.mxu3 %vm362_vm2, %v3011_v62 }
 0x11b   : > { %4171 = vst [vmem:[#allocation48_spill] sm:$0xff] %v3502_v49  ;;  %2415 = vmatmul.msk.f32.gmra.mxu0 %vm362_vm2, %v3090_v56  ;;  %v4173_v49 = vrot.slane %v3093_v2, 1 }
 0x11c   : > { %v844_v58 = vpop.f32.mrf.mxu2 }
 0x11d   : > { %v983_v12 = vpop.f32.mrf.mxu3  ;;  %v912_v38 = vadd.f32 %v844_v58, %v625_v13  ;;  %v627_v48 = vpop.f32.mrf.mxu1 }
 0x11e   : > { %v628_v29 = vadd.f32 %v627_v48, %v3279_v45 }
 0x11f   : > { %v1051_v30 = vadd.f32 %v983_v12, %v912_v38  ;;  %v3532_v38 = vsel %vm686_vm3, %v738_v21, %v740_v23  ;;  %v3548_v21 = vld [vmem:[%s2853_s26 + $0xf0] sm:$0xff] }
 0x120   : > { %2326 = vmatmul.msk.f32.gmra.mxu1 %vm362_vm2, %v2975_v50  ;;  %v1129_v36 = vpop.f32.mrf.mxu0 }
 0x121   : > { %v3517_v61 = vadd.f32 %v1126_v57, %v1051_v30  ;;  %2356 = vmatmul.msk.f32.gmra.mxu2 %vm362_vm2, %v3513_v33  ;;  %v1074_v57 = vrot.slane %v3524_v63, 1 }
 0x122   : > { %2386 = vmatmul.msk.f32.gmra.mxu3 %vm362_vm2, %v3059_v31 }
 0x123   : > { %4172 = vst [vmem:[#allocation49_spill] sm:$0xff] %v3517_v61  ;;  %2416 = vmatmul.msk.f32.gmra.mxu0 %vm362_vm2, %v3120_v14  ;;  %v3539_v45 = vsel %vm304_vm1, %v4173_v49, %v1074_v57  ;;  %v2742_v14 = vmov 0  }
 0x124   : > { %v847_v50 = vpop.f32.mrf.mxu2  ;;  %2600 = vset.pattern.permute.xlu0 %v2742_v14  ;;  %2601 = vset.pattern.permute.xlu1 %v2742_v14 }
 0x125   : > { %v986_v13 = vpop.f32.mrf.mxu3  ;;  %v913_v58 = vadd.f32 %v847_v50, %v628_v29  ;;  %v630_v12 = vpop.f32.mrf.mxu1  ;;  %v742_v29 = vrot.slane %v3093_v2, 2  ;;  %2602 = vset.pattern.permute.xlu2 %v2742_v14 }
 0x127   : > { %v1052_v30 = vadd.f32 %v986_v13, %v913_v58 }
 0x128   : > { %2327 = vmatmul.msk.f32.gmra.mxu1 %vm362_vm2, %v3011_v62  ;;  %v1132_v61 = vpop.f32.mrf.mxu0  ;;  %v631_v62 = vadd.f32 %v630_v12, %v3299_v17  ;;  %v1808_v17 = vld [vmem:[%s4087_s2] sm:$0xff] }
 0x129   : > { %v3541_v48 = vadd.f32 %v1129_v36, %v1052_v30  ;;  %2357 = vmatmul.msk.f32.gmra.mxu2 %vm362_vm2, %v3532_v38  ;;  %v4129_v36 = vrot.slane %v3548_v21, 1  ;;  %v3558_v30 = vsel %vm686_vm3, %v740_v23, %v742_v29  ;;  %1838 = vperm.xlu0 %2600, %v1808_v17  }
 0x12a   : > { %2387 = vmatmul.msk.f32.gmra.mxu3 %vm362_vm2, %v3093_v2  ;;  %v1218_v2 = vrot.slane %v3548_v21, 2 }
 0x12b   : > { %4174 = vst [vmem:[#allocation50_spill] sm:$0xff] %v3541_v48  ;;  %2417 = vmatmul.msk.f32.gmra.mxu0 %vm362_vm2, %v3539_v45 }
 0x12c   : > { %v850_v50 = vpop.f32.mrf.mxu2 }
 0x12d   : > { %v989_v49 = vpop.f32.mrf.mxu3  ;;  %v914_v13 = vadd.f32 %v850_v50, %v631_v62  ;;  %v633_v58 = vpop.f32.mrf.mxu1  ;;  %v3568_v62 = vsel %vm304_vm1, %v1074_v57, %v4129_v36 }
 0x12e   : > { %v634_v50 = vadd.f32 %v633_v58, %v3319_v42 }
 0x12f   : > { %v1053_v48 = vadd.f32 %v989_v49, %v914_v13 }
 0x130   : > { %2328 = vmatmul.msk.f32.gmra.mxu1 %vm362_vm2, %v3059_v31  ;;  %v1135_v12 = vpop.f32.mrf.mxu0 }
 0x131   : > { %v3570_v23 = vadd.f32 %v1132_v61, %v1053_v48  ;;  %2358 = vmatmul.msk.f32.gmra.mxu2 %vm362_vm2, %v3558_v30  ;;  %v1809_v61 = vld [vmem:[%s4087_s2 + $0x8] sm:$0xff] }
 0x132   : > { %2388 = vmatmul.msk.f32.gmra.mxu3 %vm362_vm2, %v3524_v63  ;;  %1843 = vperm.xlu0 %2600, %v1809_v61   ;;  %v1811_v61 = vld [vmem:[%s4087_s2 + $0x18] sm:$0xff] }
 0x133   : > { %2418 = vmatmul.msk.f32.gmra.mxu0 %vm362_vm2, %v3568_v62 }
 0x134   : > { %v853_v31 = vpop.f32.mrf.mxu2 }
 0x135   : > { %v992_v49 = vpop.f32.mrf.mxu3  ;;  %v915_v13 = vadd.f32 %v853_v31, %v634_v50  ;;  %v636_v57 = vpop.f32.mrf.mxu1 }
 0x136   : > { %v637_v42 = vadd.f32 %v636_v57, %v3339_v52 }
 0x137   : > { %v1054_v36 = vadd.f32 %v992_v49, %v915_v13 }
 0x138   : > { %2421 = vmatmul.msk.f32.vlgmr.msra.gmra.mxu1 %vm362_vm2, %v3156_v43  ;;  %v1138_v48 = vpop.f32.mrf.mxu0 }
 0x139   : > { %v3584_v14 = vadd.f32 %v1135_v12, %v1054_v36  ;;  %2451 = vmatmul.msk.f32.vlgmr.msra.gmra.mxu2 %vm362_vm2, %v2988_v53  ;;  %v1810_v36 = vld [vmem:[%s4087_s2 + $0x10] sm:$0xff] }
 0x13a   : > { %2481 = vmatmul.msk.f32.vlgmr.msra.gmra.mxu3 %vm362_vm2, %v3064_v32  ;;  %1848 = vperm.xlu1 %2601, %v1810_v36  }
 0x13b   : > { %2511 = vmatmul.msk.f32.vlgmr.msra.gmra.mxu0 %vm362_vm2, %v3180_v0 }
 0x13c   : > { %v856_v58 = vpop.f32.mrf.mxu2 }
 0x13d   : > { %v995_v17 = vpop.f32.mrf.mxu3  ;;  %v916_v50 = vadd.f32 %v856_v58, %v637_v42  ;;  %v639_v31 = vpop.f32.mrf.mxu1 }
 0x13e   : > { %v640_v52 = vadd.f32 %v639_v31, %v3359_v22 }
 0x13f   : > { %v1055_v43 = vadd.f32 %v995_v17, %v916_v50 }
 0x140   : > { %2422 = vmatmul.msk.f32.gmra.mxu1 %vm362_vm2, %v3168_v51  ;;  %v1141_v53 = vpop.f32.mrf.mxu0 }
 0x141   : > { %v3598_v32 = vadd.f32 %v1138_v48, %v1055_v43  ;;  %2452 = vmatmul.msk.f32.gmra.mxu2 %vm362_vm2, %v3020_v1 }
 0x142   : > { %2482 = vmatmul.msk.f32.gmra.mxu3 %vm362_vm2, %v3098_v3  ;;  %1853 = vperm.xlu1 %2601, %v1811_v61  }
 0x143   : > { %2512 = vmatmul.msk.f32.gmra.mxu0 %vm362_vm2, %v3192_v44 }
 0x144   : > { %v859_v12 = vpop.f32.mrf.mxu2 }
 0x145   : > { %v998_v49 = vpop.f32.mrf.mxu3  ;;  %v917_v13 = vadd.f32 %v859_v12, %v640_v52  ;;  %v642_v57 = vpop.f32.mrf.mxu1 }
 0x146   : > { %v643_v22 = vadd.f32 %v642_v57, %v3255_v15 }
 0x147   : > { %v1056_v51 = vadd.f32 %v998_v49, %v917_v13  ;;  %v4179_v13 = vld [vmem:[#allocation27_spill] sm:$0xff] }
 0x148   : > { %2423 = vmatmul.msk.f32.gmra.mxu1 %vm362_vm2, %v3180_v0  ;;  %v1144_v1 = vpop.f32.mrf.mxu0 }
 0x149   : > { %v3612_v3 = vadd.f32 %v1141_v53, %v1056_v51  ;;  %2453 = vmatmul.msk.f32.gmra.mxu2 %vm362_vm2, %v3072_v40 }
 0x14a   : > { %2483 = vmatmul.msk.f32.gmra.mxu3 %vm362_vm2, %v3127_v16  ;;  %v4175_v16 = vld [vmem:[#allocation26_spill] sm:$0xff] }
 0x14b   : > { %2513 = vmatmul.msk.f32.gmra.mxu0 %vm362_vm2, %v3204_v11 }
 0x14c   : > { %v862_v48 = vpop.f32.mrf.mxu2 }
 0x14d   : > { %v1001_v42 = vpop.f32.mrf.mxu3  ;;  %v918_v58 = vadd.f32 %v862_v48, %v643_v22  ;;  %v645_v17 = vpop.f32.mrf.mxu1 }
 0x14e   : > { %v646_v40 = vadd.f32 %v645_v17, %v3275_v8  ;;  %v4178_v8 = vld [vmem:[#allocation33_spill] sm:$0xff]  ;;  %v4181_v17 = vld [vmem:[#allocation15_spill] sm:$0xff] }
 0x14f   : > { %v1057_v0 = vadd.f32 %v1001_v42, %v918_v58  ;;  %v4180_v58 = vld [vmem:[#allocation10_spill] sm:$0xff] }
 0x150   : > { %2424 = vmatmul.msk.f32.gmra.mxu1 %vm362_vm2, %v3192_v44  ;;  %v1147_v50 = vpop.f32.mrf.mxu0 }
 0x151   : > { %v3623_v31 = vadd.f32 %v1144_v1, %v1057_v0  ;;  %2454 = vmatmul.msk.f32.gmra.mxu2 %vm362_vm2, %v2856_v5  ;;  %v4176_v5 = vld [vmem:[#allocation9_spill] sm:$0xff]  ;;  %v4182_v0 = vld [vmem:[#allocation36_spill] sm:$0xff] }
 0x152   : > { %2484 = vmatmul.msk.f32.gmra.mxu3 %vm362_vm2, %v2888_v19  ;;  %v4177_v19 = vld [vmem:[#allocation12_spill] sm:$0xff] }
 0x153   : > { %2514 = vmatmul.msk.f32.gmra.mxu0 %vm362_vm2, %v4175_v16 }
 0x154   : > { %v865_v15 = vpop.f32.mrf.mxu2 }
 0x155   : > { %v1004_v43 = vpop.f32.mrf.mxu3  ;;  %v919_v36 = vadd.f32 %v865_v15, %v646_v40  ;;  %v648_v53 = vpop.f32.mrf.mxu1  ;;  %v4183_v40 = vld [vmem:[#allocation28_spill] sm:$0xff] }
 0x156   : > { %v649_v49 = vadd.f32 %v648_v53, %v4178_v8  ;;  %v4184_v8 = vld [vmem:[#allocation14_spill] sm:$0xff] }
 0x157   : > { %v1058_v52 = vadd.f32 %v1004_v43, %v919_v36 }
 0x158   : > { %2425 = vmatmul.msk.f32.gmra.mxu1 %vm362_vm2, %v3204_v11  ;;  %v1150_v44 = vpop.f32.mrf.mxu0  ;;  %v1814_v11 = vld [vmem:[%s4087_s2 + $0x30] sm:$0xff] }
 0x159   : > { %v3634_v12 = vadd.f32 %v1147_v50, %v1058_v52  ;;  %2455 = vmatmul.msk.f32.gmra.mxu2 %vm362_vm2, %v4176_v5  ;;  %1868 = vperm.xlu0 %2600, %v1814_v11   ;;  %v1812_v52 = vld [vmem:[%s4087_s2 + $0x20] sm:$0xff] }
 0x15a   : > { %2485 = vmatmul.msk.f32.gmra.mxu3 %vm362_vm2, %v4177_v19  ;;  %1858 = vperm.xlu2 %2602, %v1812_v52  }
 0x15b   : > { %2515 = vmatmul.msk.f32.gmra.mxu0 %vm362_vm2, %v4179_v13 }
 0x15c   : > { %v868_v57 = vpop.f32.mrf.mxu2 }
 0x15d   : > { %v1007_v51 = vpop.f32.mrf.mxu3  ;;  %v920_v61 = vadd.f32 %v868_v57, %v649_v49  ;;  %v651_v1 = vpop.f32.mrf.mxu1  ;;  %v4185_v49 = vld [vmem:[#allocation18_spill] sm:$0xff]  ;;  %v4186_v57 = vld [vmem:[#allocation39_spill] sm:$0xff] }
 0x15e   : > { %v652_v50 = vadd.f32 %v651_v1, %v4182_v0 }
 0x15f   : > { %v1059_v22 = vadd.f32 %v1007_v51, %v920_v61  ;;  %v4187_v61 = vld [vmem:[#allocation30_spill] sm:$0xff] }
 0x160   : > { %2426 = vmatmul.msk.f32.gmra.mxu1 %vm362_vm2, %v4175_v16  ;;  %v1153_v48 = vpop.f32.mrf.mxu0 }
 0x161   : > { %v3648_v42 = vadd.f32 %v1150_v44, %v1059_v22  ;;  %2456 = vmatmul.msk.f32.gmra.mxu2 %vm362_vm2, %v4180_v58  ;;  %v1815_v44 = vld [vmem:[%s4087_s2 + $0x38] sm:$0xff] }
 0x162   : > { %2486 = vmatmul.msk.f32.gmra.mxu3 %vm362_vm2, %v4181_v17  ;;  %1873 = vperm.xlu1 %2601, %v1815_v44  }
 0x163   : > { %2516 = vmatmul.msk.f32.gmra.mxu0 %vm362_vm2, %v4183_v40 }
 0x164   : > { %v871_v15 = vpop.f32.mrf.mxu2 }
 0x165   : > { %v1010_v43 = vpop.f32.mrf.mxu3  ;;  %v921_v36 = vadd.f32 %v871_v15, %v652_v50  ;;  %v654_v53 = vpop.f32.mrf.mxu1  ;;  %v4188_v50 = vld [vmem:[#allocation17_spill] sm:$0xff] }
 0x166   : > { %v655_v51 = vadd.f32 %v654_v53, %v4186_v57  ;;  %v4189_v15 = vld [vmem:[#allocation21_spill] sm:$0xff]  ;;  %v4191_v53 = vld [vmem:[#allocation32_spill] sm:$0xff] }
 0x167   : > { %v1060_v16 = vadd.f32 %v1010_v43, %v921_v36  ;;  %v4190_v43 = vld [vmem:[#allocation42_spill] sm:$0xff] }
 0x168   : > { %2427 = vmatmul.msk.f32.gmra.mxu1 %vm362_vm2, %v4179_v13  ;;  %v1156_v5 = vpop.f32.mrf.mxu0 }
 0x169   : > { %v3665_v19 = vadd.f32 %v1153_v48, %v1060_v16  ;;  %2457 = vmatmul.msk.f32.gmra.mxu2 %vm362_vm2, %v4184_v8  ;;  %v1813_v48 = vld [vmem:[%s4087_s2 + $0x28] sm:$0xff] }
 0x16a   : > { %2487 = vmatmul.msk.f32.gmra.mxu3 %vm362_vm2, %v4185_v49  ;;  %1863 = vperm.xlu2 %2602, %v1813_v48  }
 0x16b   : > { %2517 = vmatmul.msk.f32.gmra.mxu0 %vm362_vm2, %v4187_v61 }
 0x16c   : > { %v874_v1 = vpop.f32.mrf.mxu2 }
 0x16d   : > { %v1013_v22 = vpop.f32.mrf.mxu3  ;;  %v922_v11 = vadd.f32 %v874_v1, %v655_v51  ;;  %v657_v13 = vpop.f32.mrf.mxu1  ;;  %v4192_v51 = vld [vmem:[#allocation19_spill] sm:$0xff] }
 0x16e   : > { %v658_v36 = vadd.f32 %v657_v13, %v4190_v43  ;;  %v4193_v1 = vld [vmem:[#allocation23_spill] sm:$0xff] }
 0x16f   : > { %v1061_v58 = vadd.f32 %v1013_v22, %v922_v11  ;;  %v4194_v22 = vld [vmem:[#allocation45_spill] sm:$0xff]  ;;  %v4195_v13 = vld [vmem:[#allocation35_spill] sm:$0xff] }
 0x170   : > { %2428 = vmatmul.msk.f32.gmra.mxu1 %vm362_vm2, %v4183_v40  ;;  %v1159_v17 = vpop.f32.mrf.mxu0 }
 0x171   : > { %v3679_v0 = vadd.f32 %v1156_v5, %v1061_v58  ;;  %2458 = vmatmul.msk.f32.gmra.mxu2 %vm362_vm2, %v4188_v50  ;;  %v1817_v5 = vld [vmem:[%s4087_s2 + $0x48] sm:$0xff] }
 0x172   : > { %2488 = vmatmul.msk.f32.gmra.mxu3 %vm362_vm2, %v4189_v15  ;;  %1883 = vperm.xlu0 %2600, %v1817_v5  }
 0x173   : > { %2518 = vmatmul.msk.f32.gmra.mxu0 %vm362_vm2, %v4191_v53 }
 0x174   : > { %v877_v16 = vpop.f32.mrf.mxu2 }
 0x175   : > { %v1016_v52 = vpop.f32.mrf.mxu3  ;;  %v923_v44 = vadd.f32 %v877_v16, %v658_v36  ;;  %v660_v8 = vpop.f32.mrf.mxu1  ;;  %v4196_v16 = vld [vmem:[#allocation22_spill] sm:$0xff] }
 0x176   : > { %v661_v11 = vadd.f32 %v660_v8, %v4194_v22 }
 0x177   : > { %v1062_v40 = vadd.f32 %v1016_v52, %v923_v44  ;;  %v4197_v52 = vld [vmem:[#allocation24_spill] sm:$0xff]  ;;  %v4198_v44 = vld [vmem:[#allocation29_spill] sm:$0xff] }
 0x178   : > { %2429 = vmatmul.msk.f32.gmra.mxu1 %vm362_vm2, %v4187_v61  ;;  %v1162_v49 = vpop.f32.mrf.mxu0 }
 0x179   : > { %v3693_v57 = vadd.f32 %v1159_v17, %v1062_v40  ;;  %2459 = vmatmul.msk.f32.gmra.mxu2 %vm362_vm2, %v4192_v51  ;;  %v1818_v17 = vld [vmem:[%s4087_s2 + $0x50] sm:$0xff] }
 0x17a   : > { %2489 = vmatmul.msk.f32.gmra.mxu3 %vm362_vm2, %v4193_v1  ;;  %1888 = vperm.xlu1 %2601, %v1818_v17   ;;  %v4199_v40 = vld [vmem:[#allocation38_spill] sm:$0xff]  ;;  %v4202_v17 = vld [vmem:[#allocation41_spill] sm:$0xff] }
 0x17b   : > { %2519 = vmatmul.msk.f32.gmra.mxu0 %vm362_vm2, %v4195_v13 }
 0x17c   : > { %v880_v58 = vpop.f32.mrf.mxu2 }
 0x17d   : > { %v1019_v48 = vpop.f32.mrf.mxu3  ;;  %v924_v50 = vadd.f32 %v880_v58, %v661_v11  ;;  %v663_v15 = vpop.f32.mrf.mxu1 }
 0x17e   : > { %v664_v8 = vadd.f32 %v663_v15, %v4198_v44  ;;  %v4201_v15 = vld [vmem:[#allocation31_spill] sm:$0xff] }
 0x17f   : > { %v1063_v61 = vadd.f32 %v1019_v48, %v924_v50  ;;  %v2603_v48 = vld [vmem:[%s2853_s26 + $0x70] sm:$0xff] }
 0x180   : > { %2430 = vmatmul.msk.f32.gmra.mxu1 %vm362_vm2, %v4191_v53  ;;  %v1165_v43 = vpop.f32.mrf.mxu0  ;;  %v4200_v50 = vld [vmem:[#allocation11_spill] sm:$0xff] }
 0x181   : > { %v3707_v36 = vadd.f32 %v1162_v49, %v1063_v61  ;;  %2460 = vmatmul.msk.f32.gmra.mxu2 %vm362_vm2, %v4196_v16  ;;  %v1816_v49 = vld [vmem:[%s4087_s2 + $0x40] sm:$0xff] }
 0x182   : > { %2490 = vmatmul.msk.f32.gmra.mxu3 %vm362_vm2, %v4197_v52  ;;  %1878 = vperm.xlu2 %2602, %v1816_v49  }
 0x183   : > { %2520 = vmatmul.msk.f32.gmra.mxu0 %vm362_vm2, %v4199_v40 }
 0x184   : > { %v883_v5 = vpop.f32.mrf.mxu2 }
 0x185   : > { %v1022_v51 = vpop.f32.mrf.mxu3  ;;  %v925_v1 = vadd.f32 %v883_v5, %v664_v8  ;;  %v666_v53 = vpop.f32.mrf.mxu1 }
 0x186   : > { %v667_v61 = vadd.f32 %v666_v53, %v4201_v15  ;;  %v4203_v53 = vld [vmem:[#allocation13_spill] sm:$0xff] }
 0x187   : > { %v1064_v22 = vadd.f32 %v1022_v51, %v925_v1  ;;  %v2604_v1 = vld [vmem:[%s2853_s26 + $0x78] sm:$0xff] }
 0x188   : > { %2431 = vmatmul.msk.f32.gmra.mxu1 %vm362_vm2, %v4195_v13  ;;  %v1168_v11 = vpop.f32.mrf.mxu0 }
 0x189   : > { %v3721_v58 = vadd.f32 %v1165_v43, %v1064_v22  ;;  %2461 = vmatmul.msk.f32.gmra.mxu2 %vm362_vm2, %v2603_v48  ;;  %v1820_v43 = vld [vmem:[%s4087_s2 + $0x60] sm:$0xff]  ;;  %v4204_v22 = vld [vmem:[#allocation34_spill] sm:$0xff] }
 0x18a   : > { %2491 = vmatmul.msk.f32.gmra.mxu3 %vm362_vm2, %v4200_v50  ;;  %1898 = vperm.xlu0 %2600, %v1820_v43   ;;  %v4205_v48 = vld [vmem:[#allocation44_spill] sm:$0xff]  ;;  %v4207_v43 = vld [vmem:[#allocation37_spill] sm:$0xff] }
 0x18b   : > { %2521 = vmatmul.msk.f32.gmra.mxu0 %vm362_vm2, %v4202_v17 }
 0x18c   : > { %v886_v16 = vpop.f32.mrf.mxu2 }
 0x18d   : > { %v1025_v52 = vpop.f32.mrf.mxu3  ;;  %v926_v44 = vadd.f32 %v886_v16, %v667_v61  ;;  %v669_v13 = vpop.f32.mrf.mxu1 }
 0x18e   : > { %v670_v49 = vadd.f32 %v669_v13, %v4204_v22  ;;  %v2605_v13 = vld [vmem:[%s2853_s26 + $0x80] sm:$0xff] }
 0x18f   : > { %v1065_v8 = vadd.f32 %v1025_v52, %v926_v44 }
 0x190   : > { %2432 = vmatmul.msk.f32.gmra.mxu1 %vm362_vm2, %v4199_v40  ;;  %v1171_v5 = vpop.f32.mrf.mxu0 }
 0x191   : > { %v3735_v51 = vadd.f32 %v1168_v11, %v1065_v8  ;;  %2462 = vmatmul.msk.f32.gmra.mxu2 %vm362_vm2, %v2604_v1  ;;  %v1821_v11 = vld [vmem:[%s4087_s2 + $0x68] sm:$0xff]  ;;  %v4206_v8 = vld [vmem:[#allocation16_spill] sm:$0xff] }
 0x192   : > { %2492 = vmatmul.msk.f32.gmra.mxu3 %vm362_vm2, %v4203_v53  ;;  %1903 = vperm.xlu1 %2601, %v1821_v11   ;;  %v4208_v53 = vld [vmem:[#allocation47_spill] sm:$0xff]  ;;  %v2606_v11 = vld [vmem:[%s2853_s26 + $0x88] sm:$0xff] }
 0x193   : > { %2522 = vmatmul.msk.f32.gmra.mxu0 %vm362_vm2, %v4205_v48 }
 0x194   : > { %v889_v50 = vpop.f32.mrf.mxu2 }
 0x195   : > { %v1028_v15 = vpop.f32.mrf.mxu3  ;;  %v927_v61 = vadd.f32 %v889_v50, %v670_v49  ;;  %v672_v40 = vpop.f32.mrf.mxu1 }
 0x196   : > { %v673_v1 = vadd.f32 %v672_v40, %v4207_v43 }
 0x197   : > { %v1066_v16 = vadd.f32 %v1028_v15, %v927_v61  ;;  %v1823_v61 = vld [vmem:[%s4087_s2 + $0x78] sm:$0xff] }
 0x198   : > { %2433 = vmatmul.msk.f32.gmra.mxu1 %vm362_vm2, %v4202_v17  ;;  %v1174_v52 = vpop.f32.mrf.mxu0  ;;  %1913 = vperm.xlu0 %2600, %v1823_v61   ;;  %v2607_v61 = vld [vmem:[%s2853_s26 + $0x90] sm:$0xff] }
 0x199   : > { %v3749_v44 = vadd.f32 %v1171_v5, %v1066_v16  ;;  %2463 = vmatmul.msk.f32.gmra.mxu2 %vm362_vm2, %v2605_v13  ;;  %v1819_v5 = vld [vmem:[%s4087_s2 + $0x58] sm:$0xff] }
 0x19a   : > { %2493 = vmatmul.msk.f32.gmra.mxu3 %vm362_vm2, %v4206_v8  ;;  %1893 = vperm.xlu2 %2602, %v1819_v5   ;;  %v4209_v13 = vld [vmem:[#allocation20_spill] sm:$0xff] }
 0x19b   : > { %2523 = vmatmul.msk.f32.gmra.mxu0 %vm362_vm2, %v4208_v53  ;;  %v4210_v8 = vld [vmem:[#allocation40_spill] sm:$0xff] }
 0x19c   : > { %v892_v22 = vpop.f32.mrf.mxu2 }
 0x19d   : > { %v1031_v49 = vpop.f32.mrf.mxu3  ;;  %v928_v50 = vadd.f32 %v892_v22, %v673_v1  ;;  %v675_v17 = vpop.f32.mrf.mxu1 }
 0x19e   : > { %v676_v43 = vadd.f32 %v675_v17, %v4210_v8  ;;  %v4211_v17 = vld [vmem:[#allocation43_spill] sm:$0xff] }
 0x19f   : > { %v1067_v15 = vadd.f32 %v1031_v49, %v928_v50 }
 0x1a0   : > { %2434 = vmatmul.msk.f32.gmra.mxu1 %vm362_vm2, %v4205_v48  ;;  %v1177_v40 = vpop.f32.mrf.mxu0 }
 0x1a1   : > { %v3766_v16 = vadd.f32 %v1174_v52, %v1067_v15  ;;  %2464 = vmatmul.msk.f32.gmra.mxu2 %vm362_vm2, %v2606_v11  ;;  %v1826_v52 = vld [vmem:[%s4087_s2 + $0x90] sm:$0xff] }
 0x1a2   : > { %2494 = vmatmul.msk.f32.gmra.mxu3 %vm362_vm2, %v4209_v13  ;;  %1928 = vperm.xlu0 %2600, %v1826_v52  }
 0x1a3   : > { %2524 = vmatmul.msk.f32.gmra.mxu0 %vm362_vm2, %v3393_v20 }
 0x1a4   : > { %v895_v1 = vpop.f32.mrf.mxu2 }
 0x1a5   : > { %v1034_v22 = vpop.f32.mrf.mxu3  ;;  %v929_v48 = vadd.f32 %v895_v1, %v676_v43  ;;  %v678_v49 = vpop.f32.mrf.mxu1 }
 0x1a6   : > { %v679_v11 = vadd.f32 %v678_v49, %v4211_v17  ;;  %v2608_v49 = vld [vmem:[%s2853_s26 + $0x98] sm:$0xff] }
 0x1a7   : > { %v1068_v50 = vadd.f32 %v1034_v22, %v929_v48 }
 0x1a8   : > { %2435 = vmatmul.msk.f32.gmra.mxu1 %vm362_vm2, %v4208_v53  ;;  %v1180_v15 = vpop.f32.mrf.mxu0  ;;  %v1824_v53 = vld [vmem:[%s4087_s2 + $0x80] sm:$0xff] }
 0x1a9   : > { %v3780_v5 = vadd.f32 %v1177_v40, %v1068_v50  ;;  %2465 = vmatmul.msk.f32.gmra.mxu2 %vm362_vm2, %v2607_v61  ;;  %1918 = vperm.xlu1 %2601, %v1824_v53   ;;  %v4212_v50 = vld [vmem:[#allocation46_spill] sm:$0xff] }
 0x1aa   : > { %2495 = vmatmul.msk.f32.gmra.mxu3 %vm362_vm2, %v3047_v26  ;;  %v1829_v26 = vld [vmem:[%s4087_s2 + $0xa8] sm:$0xff] }
 0x1ab   : > { %2525 = vmatmul.msk.f32.gmra.mxu0 %vm362_vm2, %v3408_v6  ;;  %1943 = vperm.xlu0 %2600, %v1829_v26  }
 0x1ac   : > { %v898_v13 = vpop.f32.mrf.mxu2 }
 0x1ad   : > { %v1037_v40 = vpop.f32.mrf.mxu3  ;;  %v930_v8 = vadd.f32 %v898_v13, %v679_v11  ;;  %v681_v43 = vpop.f32.mrf.mxu1  ;;  %v1832_v13 = vld [vmem:[%s4087_s2 + $0xc0] sm:$0xff] }
 0x1ae   : > { %v682_v52 = vadd.f32 %v681_v43, %v4212_v50  ;;  %v2609_v43 = vld [vmem:[%s2853_s26 + $0xa0] sm:$0xff]  ;;  %v1839_v50 = vpop.permute.xlu0 %1838 }
 0x1af   : > { %v1069_v1 = vadd.f32 %v1037_v40, %v930_v8 }
 0x1b0   : > { %2436 = vmatmul.msk.f32.gmra.mxu1 %vm362_vm2, %v3393_v20  ;;  %v1183_v22 = vpop.f32.mrf.mxu0  ;;  %v1827_v20 = vld [vmem:[%s4087_s2 + $0x98] sm:$0xff] }
 0x1b1   : > { %v3797_v48 = vadd.f32 %v1180_v15, %v1069_v1  ;;  %2466 = vmatmul.msk.f32.gmra.mxu2 %vm362_vm2, %v2608_v49  ;;  %1933 = vperm.xlu1 %2601, %v1827_v20   ;;  %v1835_v20 = vld [vmem:[%s4087_s2 + $0xd8] sm:$0xff] }
 0x1b2   : > { %2496 = vmatmul.msk.f32.gmra.mxu3 %vm362_vm2, %v3087_v55  ;;  %v1822_v55 = vld [vmem:[%s4087_s2 + $0x70] sm:$0xff] }
 0x1b3   : > { %2526 = vmatmul.msk.f32.gmra.mxu0 %vm362_vm2, %v3423_v10  ;;  %1908 = vperm.xlu2 %2602, %v1822_v55  }
 0x1b4   : > { %v901_v15 = vpop.f32.mrf.mxu2  ;;  %1958 = vperm.xlu0 %2600, %v1832_v13  }
 0x1b5   : > { %v1040_v61 = vpop.f32.mrf.mxu3  ;;  %v931_v17 = vadd.f32 %v901_v15, %v682_v52  ;;  %v1244_v11 = vpop.f32.mrf.mxu1 }
 0x1b6   : > { %v1328_v1 = vadd.f32 %v1244_v11, %v3397_v39 }
 0x1b7   : > { %v1070_v53 = vadd.f32 %v1040_v61, %v931_v17  ;;  %v2610_v61 = vld [vmem:[%s2853_s26 + $0xa8] sm:$0xff] }
 0x1b8   : > { %2437 = vmatmul.msk.f32.gmra.mxu1 %vm362_vm2, %v3408_v6  ;;  %v1668_v40 = vpop.f32.mrf.mxu0  ;;  %v1830_v6 = vld [vmem:[%s4087_s2 + $0xb0] sm:$0xff] }
 0x1b9   : > { %v3817_v8 = vadd.f32 %v1183_v22, %v1070_v53  ;;  %2467 = vmatmul.msk.f32.gmra.mxu2 %vm362_vm2, %v2609_v43  ;;  %1948 = vperm.xlu1 %2601, %v1830_v6  }
 0x1ba   : > { %2497 = vmatmul.msk.f32.gmra.mxu3 %vm362_vm2, %v3115_v9 }
 0x1bb   : > { %2527 = vmatmul.msk.f32.gmra.mxu0 %vm362_vm2, %v3438_v24 }
 0x1bc   : > { %v1383_v26 = vpop.f32.mrf.mxu2  ;;  %1973 = vperm.xlu0 %2600, %v1835_v20  }
 0x1bd   : > { %v1526_v22 = vpop.f32.mrf.mxu3  ;;  %v1467_v49 = vadd.f32 %v1383_v26, %v1328_v1  ;;  %v1247_v9 = vpop.f32.mrf.mxu1  ;;  %v2611_v26 = vld [vmem:[%s2853_s26 + $0xb0] sm:$0xff] }
 0x1be   : > { %v1329_v17 = vadd.f32 %v1247_v9, %v3412_v34  ;;  %v1825_v34 = vld [vmem:[%s4087_s2 + $0x88] sm:$0xff] }
 0x1bf   : > { %v1610_v52 = vadd.f32 %v1526_v22, %v1467_v49  ;;  %1923 = vperm.xlu2 %2602, %v1825_v34  }
 0x1c0   : > { %2438 = vmatmul.msk.f32.gmra.mxu1 %vm362_vm2, %v3423_v10  ;;  %v1671_v39 = vpop.f32.mrf.mxu0  ;;  %v1833_v10 = vld [vmem:[%s4087_s2 + $0xc8] sm:$0xff] }
 0x1c1   : > { %v1752_v15 = vadd.f32 %v1668_v40, %v1610_v52  ;;  %2468 = vmatmul.msk.f32.gmra.mxu2 %vm362_vm2, %v2610_v61  ;;  %1963 = vperm.xlu1 %2601, %v1833_v10   ;;  %v1844_v40 = vpop.permute.xlu0 %1843 }
 0x1c2   : > { %2498 = vmatmul.msk.f32.gmra.mxu3 %vm362_vm2, %v2910_v25 }
 0x1c3   : > { %1780 = vst [vmem:[%s3843_s30] sm:$0xff] %v1752_v15  ;;  %2528 = vmatmul.msk.f32.gmra.mxu0 %vm362_vm2, %v3453_v4  ;;  %v1976_v1 = vmul.f32 %v1839_v50, %v1752_v15 }
 0x1c4   : > { %v1386_v11 = vpop.f32.mrf.mxu2 }
 0x1c5   : > { %v1529_v53 = vpop.f32.mrf.mxu3  ;;  %v1468_v25 = vadd.f32 %v1386_v11, %v1329_v17  ;;  %v1250_v55 = vpop.f32.mrf.mxu1  ;;  %v2038_v52 = vmul.f32 %v1976_v1, %v1752_v15 }
 0x1c6   : > { %v1330_v22 = vadd.f32 %v1250_v55, %v3427_v7  ;;  %v1849_v17 = vpop.permute.xlu1 %1848 }
 0x1c7   : > { %v1611_v13 = vadd.f32 %v1529_v53, %v1468_v25  ;;  %v2612_v25 = vld [vmem:[%s2853_s26 + $0xb8] sm:$0xff] }
 0x1c8   : > { %2439 = vmatmul.msk.f32.gmra.mxu1 %vm362_vm2, %v3438_v24  ;;  %v1674_v43 = vpop.f32.mrf.mxu0 }
 0x1c9   : > { %v1753_v6 = vadd.f32 %v1671_v39, %v1611_v13  ;;  %2469 = vmatmul.msk.f32.gmra.mxu2 %vm362_vm2, %v2611_v26 }
 0x1ca   : > { %2499 = vmatmul.msk.f32.gmra.mxu3 %vm362_vm2, %v2933_v35  ;;  %v1828_v35 = vld [vmem:[%s4087_s2 + $0xa0] sm:$0xff] }
 0x1cb   : > { %1781 = vst [vmem:[%s3843_s30 + $0x8] sm:$0xff] %v1753_v6  ;;  %v1977_v49 = vmul.f32 %v1844_v40, %v1753_v6  ;;  %2529 = vmatmul.msk.f32.gmra.mxu0 %vm362_vm2, %v3468_v46  ;;  %1938 = vperm.xlu2 %2602, %v1828_v35  }
 0x1cc   : > { %v1389_v9 = vpop.f32.mrf.mxu2 }
 0x1cd   : > { %v1532_v24 = vpop.f32.mrf.mxu3  ;;  %v2004_v20 = vadd.f32 %v1977_v49, %v1976_v1  ;;  %v2039_v50 = vmul.f32 %v1977_v49, %v1753_v6  ;;  %v1469_v39 = vadd.f32 %v1389_v9, %v1330_v22  ;;  %v1253_v61 = vpop.f32.mrf.mxu1  ;;  %v1831_v6 = vld [vmem:[%s4087_s2 + $0xb8] sm:$0xff]  ;;  %v2613_v9 = vld [vmem:[%s2853_s26 + $0xc0] sm:$0xff] }
 0x1ce   : > { %v1331_v15 = vadd.f32 %v1253_v61, %v3442_v18  ;;  %v1854_v26 = vpop.permute.xlu1 %1853 }
 0x1cf   : > { %v2066_v7 = vadd.f32 %v2039_v50, %v2038_v52  ;;  %v1612_v10 = vadd.f32 %v1532_v24, %v1469_v39 }
 0x1d0   : > { %2440 = vmatmul.msk.f32.gmra.mxu1 %vm362_vm2, %v3453_v4  ;;  %v1677_v11 = vpop.f32.mrf.mxu0 }
 0x1d1   : > { %v1754_v53 = vadd.f32 %v1674_v43, %v1612_v10  ;;  %2470 = vmatmul.msk.f32.gmra.mxu2 %vm362_vm2, %v2612_v25 }
 0x1d2   : > { %2500 = vmatmul.msk.f32.gmra.mxu3 %vm362_vm2, %v2966_v47 }
 0x1d3   : > { %1782 = vst [vmem:[%s3843_s30 + $0x10] sm:$0xff] %v1754_v53  ;;  %v1978_v55 = vmul.f32 %v1849_v17, %v1754_v53  ;;  %2530 = vmatmul.msk.f32.gmra.mxu0 %vm362_vm2, %v3483_v59  ;;  %1953 = vperm.xlu2 %2602, %v1831_v6   ;;  %v1834_v17 = vld [vmem:[%s4087_s2 + $0xd0] sm:$0xff] }
 0x1d4   : > { %v1392_v34 = vpop.f32.mrf.mxu2 }
 0x1d5   : > { %v1535_v13 = vpop.f32.mrf.mxu3  ;;  %v2005_v40 = vadd.f32 %v2004_v20, %v1978_v55  ;;  %v2040_v4 = vmul.f32 %v1978_v55, %v1754_v53  ;;  %v1470_v43 = vadd.f32 %v1392_v34, %v1331_v15  ;;  %v1256_v1 = vpop.f32.mrf.mxu1  ;;  %v2614_v53 = vld [vmem:[%s2853_s26 + $0xc8] sm:$0xff] }
 0x1d6   : > { %v1332_v24 = vadd.f32 %v1256_v1, %v3457_v54 }
 0x1d7   : > { %v2067_v47 = vadd.f32 %v2066_v7, %v2040_v4  ;;  %v1613_v18 = vadd.f32 %v1535_v13, %v1470_v43 }
 0x1d8   : > { %2441 = vmatmul.msk.f32.gmra.mxu1 %vm362_vm2, %v3468_v46  ;;  %v1680_v22 = vpop.f32.mrf.mxu0 }
 0x1d9   : > { %v1755_v49 = vadd.f32 %v1677_v11, %v1613_v18  ;;  %2471 = vmatmul.msk.f32.gmra.mxu2 %vm362_vm2, %v2613_v9 }
 0x1da   : > { %2501 = vmatmul.msk.f32.gmra.mxu3 %vm362_vm2, %v3005_v60  ;;  %v1859_v60 = vpop.permute.xlu2 %1858 }
 0x1db   : > { %1783 = vst [vmem:[%s3843_s30 + $0x18] sm:$0xff] %v1755_v49  ;;  %v1979_v52 = vmul.f32 %v1854_v26, %v1755_v49  ;;  %2531 = vmatmul.msk.f32.gmra.mxu0 %vm362_vm2, %v3498_v41  ;;  %1968 = vperm.xlu2 %2602, %v1834_v17  }
 0x1dc   : > { %v1395_v20 = vpop.f32.mrf.mxu2 }
 0x1dd   : > { %v1538_v50 = vpop.f32.mrf.mxu3  ;;  %v2006_v46 = vadd.f32 %v2005_v40, %v1979_v52  ;;  %v2041_v39 = vmul.f32 %v1979_v52, %v1755_v49  ;;  %v1471_v61 = vadd.f32 %v1395_v20, %v1332_v24  ;;  %v1259_v35 = vpop.f32.mrf.mxu1 }
 0x1de   : > { %v1333_v25 = vadd.f32 %v1259_v35, %v3472_v28  ;;  %v4214_v35 = vld [vmem:[#allocation48_spill] sm:$0xff] }
 0x1df   : > { %v2068_v54 = vadd.f32 %v2067_v47, %v2041_v39  ;;  %v1614_v7 = vadd.f32 %v1538_v50, %v1471_v61  ;;  %v2615_v47 = vld [vmem:[%s2853_s26 + $0xd0] sm:$0xff]  ;;  %v2616_v39 = vld [vmem:[%s2853_s26 + $0xd8] sm:$0xff]  ;;  %v4213_v61 = vld [vmem:[#allocation25_spill] sm:$0xff] }
 0x1e0   : > { %2442 = vmatmul.msk.f32.gmra.mxu1 %vm362_vm2, %v3483_v59  ;;  %v1683_v10 = vpop.f32.mrf.mxu0 }
 0x1e1   : > { %v1756_v11 = vadd.f32 %v1680_v22, %v1614_v7  ;;  %2472 = vmatmul.msk.f32.gmra.mxu2 %vm362_vm2, %v2614_v53 }
 0x1e2   : > { %2502 = vmatmul.msk.f32.gmra.mxu3 %vm362_vm2, %v3050_v27  ;;  %v1864_v27 = vpop.permute.xlu2 %1863 }
 0x1e3   : > { %1784 = vst [vmem:[%s3843_s30 + $0x20] sm:$0xff] %v1756_v11  ;;  %v1980_v15 = vmul.f32 %v1859_v60, %v1756_v11  ;;  %2532 = vmatmul.msk.f32.gmra.mxu0 %vm362_vm2, %v3513_v33 }
 0x1e4   : > { %v1398_v55 = vpop.f32.mrf.mxu2 }
 0x1e5   : > { %v1541_v34 = vpop.f32.mrf.mxu3  ;;  %v2007_v59 = vadd.f32 %v2006_v46, %v1980_v15  ;;  %v2042_v13 = vmul.f32 %v1980_v15, %v1756_v11  ;;  %v1472_v40 = vadd.f32 %v1398_v55, %v1333_v25  ;;  %v1262_v4 = vpop.f32.mrf.mxu1 }
 0x1e6   : > { %v1334_v18 = vadd.f32 %v1262_v4, %v3487_v37  ;;  %v2617_v4 = vld [vmem:[%s2853_s26 + $0xe0] sm:$0xff] }
 0x1e7   : > { %v2069_v43 = vadd.f32 %v2068_v54, %v2042_v13  ;;  %v1615_v1 = vadd.f32 %v1541_v34, %v1472_v40  ;;  %v1216_v54 = vrot.slane %v3524_v63, 2  ;;  %v1874_v34 = vpop.permute.xlu1 %1873 }
 0x1e8   : > { %2443 = vmatmul.msk.f32.gmra.mxu1 %vm362_vm2, %v3498_v41  ;;  %v1686_v28 = vpop.f32.mrf.mxu0 }
 0x1e9   : > { %v1757_v6 = vadd.f32 %v1683_v10, %v1615_v1  ;;  %2473 = vmatmul.msk.f32.gmra.mxu2 %vm362_vm2, %v2615_v47  ;;  %v1217_v13 = vsel %vm686_vm3, %v742_v29, %v1216_v54 }
 0x1ea   : > { %2503 = vmatmul.msk.f32.gmra.mxu3 %vm362_vm2, %v3090_v56  ;;  %v1869_v56 = vpop.permute.xlu0 %1868 }
 0x1eb   : > { %1785 = vst [vmem:[%s3843_s30 + $0x28] sm:$0xff] %v1757_v6  ;;  %v1981_v26 = vmul.f32 %v1864_v27, %v1757_v6  ;;  %2533 = vmatmul.msk.f32.gmra.mxu0 %vm362_vm2, %v3532_v38 }
 0x1ec   : > { %v1401_v22 = vpop.f32.mrf.mxu2 }
 0x1ed   : > { %v1544_v41 = vpop.f32.mrf.mxu3  ;;  %v2008_v49 = vadd.f32 %v2007_v59, %v1981_v26  ;;  %v2043_v9 = vmul.f32 %v1981_v26, %v1757_v6  ;;  %v1473_v24 = vadd.f32 %v1401_v22, %v1334_v18  ;;  %v1265_v52 = vpop.f32.mrf.mxu1 }
 0x1ee   : > { %v1335_v17 = vadd.f32 %v1265_v52, %v4214_v35 }
 0x1ef   : > { %v2070_v20 = vadd.f32 %v2069_v43, %v2043_v9  ;;  %v1616_v50 = vadd.f32 %v1544_v41, %v1473_v24  ;;  %v4215_v43 = vld [vmem:[#allocation49_spill] sm:$0xff]  ;;  %v270_v41 = vld [vmem:[%s2853_s26 + $0xf8] sm:$0xff]  ;;  %v1219_v9 = vsel %vm686_vm3, %v1216_v54, %v1218_v2 }
 0x1f0   : > { %2444 = vmatmul.msk.f32.gmra.mxu1 %vm362_vm2, %v3513_v33  ;;  %v1689_v37 = vpop.f32.mrf.mxu0  ;;  %v1498_v52 = vrot.slane %v270_v41, 1 }
 0x1f1   : > { %v1758_v46 = vadd.f32 %v1686_v28, %v1616_v50  ;;  %2474 = vmatmul.msk.f32.gmra.mxu2 %vm362_vm2, %v2616_v39 }
 0x1f2   : > { %2504 = vmatmul.msk.f32.gmra.mxu3 %vm362_vm2, %v4213_v61 }
 0x1f3   : > { %1786 = vst [vmem:[%s3843_s30 + $0x30] sm:$0xff] %v1758_v46  ;;  %v1982_v60 = vmul.f32 %v1869_v56, %v1758_v46  ;;  %2534 = vmatmul.msk.f32.gmra.mxu0 %vm362_vm2, %v3558_v30 }
 0x1f4   : > { %v1404_v33 = vpop.f32.mrf.mxu2 }
 0x1f5   : > { %v1547_v7 = vpop.f32.mrf.mxu3  ;;  %v2009_v10 = vadd.f32 %v2008_v49, %v1982_v60  ;;  %v2044_v11 = vmul.f32 %v1982_v60, %v1758_v46  ;;  %v1474_v53 = vadd.f32 %v1404_v33, %v1335_v17  ;;  %v1268_v25 = vpop.f32.mrf.mxu1  ;;  %v1640_v46 = vrot.slane %v270_v41, 2  ;;  %v271_v33 = vld [vmem:[%s2853_s26 + $0x100] sm:$0x3]  ;;  %s2547_s26 = smul.u32 224, %s2796_s22 }
 0x1f6   : > { %v1336_v1 = vadd.f32 %v1268_v25, %v4215_v43  ;;  %v1500_v25 = vrot.slane %v271_v33, 1 }
 0x1f7   : > { %v2071_v15 = vadd.f32 %v2070_v20, %v2044_v11  ;;  %v1617_v55 = vadd.f32 %v1547_v7, %v1474_v53  ;;  %v4216_v20 = vld [vmem:[#allocation50_spill] sm:$0xff]  ;;  %v1884_v7 = vpop.permute.xlu0 %1883  ;;  %v1641_v11 = vsel %vm686_vm3, %v1218_v2, %v1640_v46  ;;  %s2120_s6 = scalar_lea.hbm %s4088_s3, %s2547_s26 }
 0x1f8   : > { %2445 = vmatmul.msk.f32.gmra.mxu1 %vm362_vm2, %v3532_v38  ;;  %v1692_v59 = vpop.f32.mrf.mxu0  ;;  %s2123_s8 = sshll.u32 %s2120_s6, 4  ;;  %s2124_s8 = int_to_ptr.hbm [resolvable:$true] %s2123_s8 }
 0x1f9   : > { %v1759_v40 = vadd.f32 %v1689_v37, %v1617_v55  ;;  %2475 = vmatmul.msk.f32.gmra.mxu2 %vm362_vm2, %v2617_v4  ;;  %s2632_s10 = sshra.s32 %s2124_s8, 4  ;;  %s2633_s10 = int_to_ptr.hbm [resolvable:$true] %s2632_s10 }
 0x1fa   : > { %2505 = vmatmul.msk.f32.gmra.mxu3 %vm362_vm2, %v3539_v45  ;;  %v1879_v45 = vpop.permute.xlu2 %1878  ;;  %s2634_s11 = scalar_lea.hbm %s2633_s10, 224  ;;  %p2639_p0 = scmp.lt.s32.totalorder %s2633_s10, %s4088_s3 }
 0x1fb   : > { %1787 = vst [vmem:[%s3843_s30 + $0x38] sm:$0xff] %v1759_v40  ;;  %v1983_v27 = vmul.f32 %v1874_v34, %v1759_v40  ;;  %2535 = vmatmul.msk.f32.gmra.mxu0 %vm362_vm2, %v1217_v13  ;;  %p2635_p11 = scmp.ne.s32.totalorder %s2633_s10, %s2634_s11  ;;  %p2640_p1 = scmp.lt.s32.totalorder %s2638_s15, %s2634_s11 }
 0x1fc   : > { %v1407_v38 = vpop.f32.mrf.mxu2 }
 0x1fd   : > { %v1550_v28 = vpop.f32.mrf.mxu3  ;;  %v2010_v6 = vadd.f32 %v2009_v10, %v1983_v27  ;;  %v2045_v29 = vmul.f32 %v1983_v27, %v1759_v40  ;;  %v1475_v47 = vadd.f32 %v1407_v38, %v1336_v1  ;;  %v1271_v18 = vpop.f32.mrf.mxu1  ;;  %v1501_v27 = vsel %vm304_vm1, %v1498_v52, %v1500_v25  ;;  %p2636_p12 = pnand %p2635_p11, %p2815_p5  ;;  %p2641_p2 = por %p2640_p1, %p2639_p0 }
 0x1fe   : > { %v1337_v50 = vadd.f32 %v1271_v18, %v4216_v20 }
 0x1ff   : > { %v2072_v26 = vadd.f32 %v2071_v15, %v2045_v29  ;;  %v1618_v22 = vadd.f32 %v1550_v28, %v1475_v47  ;;  %v1889_v28 = vpop.permute.xlu1 %1888  ;;  %p2637_p13 = pneg %p2636_p12 }
 0x200   : > { %2446 = vmatmul.msk.f32.gmra.mxu1 %vm362_vm2, %v3558_v30  ;;  %v1695_v49 = vpop.f32.mrf.mxu0 }
 0x201   : > { %v1760_v24 = vadd.f32 %v1692_v59, %v1618_v22  ;;  %2476 = vmatmul.msk.f32.gmra.mxu2 %vm362_vm2, %v3524_v63  ;;  %v4217_v63 = vrot.slane %v3548_v21, 1  ;;  %p2642_p3 = pnand %p2641_p2, %p2637_p13 }
 0x202   : > { %2506 = vmatmul.msk.f32.gmra.mxu3 %vm362_vm2, %v3568_v62  ;;  %v1894_v20 = vpop.permute.xlu2 %1893 }
 0x203   : > { %1788 = vst [vmem:[%s3843_s30 + $0x40] sm:$0xff] %v1760_v24  ;;  %v1984_v56 = vmul.f32 %v1879_v45, %v1760_v24  ;;  %2536 = vmatmul.msk.f32.gmra.mxu0 %vm362_vm2, %v1219_v9  ;;  %v1499_v62 = vsel %vm304_vm1, %v4217_v63, %v1498_v52 }
 0x204   : > { %v1410_v30 = vpop.f32.mrf.mxu2 }
 0x205   : > { %v1553_v37 = vpop.f32.mrf.mxu3  ;;  %v2011_v39 = vadd.f32 %v2010_v6, %v1984_v56  ;;  %v2046_v61 = vmul.f32 %v1984_v56, %v1760_v24  ;;  %v1476_v35 = vadd.f32 %v1410_v30, %v1337_v50  ;;  %v1274_v17 = vpop.f32.mrf.mxu1 }
 0x206   : > { %v1338_v15 = vadd.f32 %v1274_v17, %v3570_v23 }
 0x207   : > { %v2073_v60 = vadd.f32 %v2072_v26, %v2046_v61  ;;  %v1619_v54 = vadd.f32 %v1553_v37, %v1476_v35 }
 0x208   : > { %2447 = vmatmul.msk.f32.gmra.mxu1 %vm362_vm2, %v1217_v13  ;;  %v1698_v10 = vpop.f32.mrf.mxu0  ;;  %v1642_v13 = vrot.slane %v271_v33, 2 }
 0x209   : > { %v1761_v53 = vadd.f32 %v1695_v49, %v1619_v54  ;;  %2477 = vmatmul.msk.f32.gmra.mxu2 %vm362_vm2, %v3548_v21 }
 0x20a   : > { %2507 = vmatmul.msk.f32.gmra.mxu3 %vm362_vm2, %v1499_v62  ;;  %v1643_v2 = vsel %vm686_vm3, %v1640_v46, %v1642_v13  ;;  %v1899_v62 = vpop.permute.xlu0 %1898 }
 0x20b   : > { %1789 = vst [vmem:[%s3843_s30 + $0x48] sm:$0xff] %v1761_v53  ;;  %v1985_v55 = vmul.f32 %v1884_v7, %v1761_v53  ;;  %2537 = vmatmul.msk.f32.gmra.mxu0 %vm362_vm2, %v1641_v11 }
 0x20c   : > { %v1413_v34 = vpop.f32.mrf.mxu2 }
 0x20d   : > { %v1556_v59 = vpop.f32.mrf.mxu3  ;;  %v2012_v40 = vadd.f32 %v2011_v39, %v1985_v55  ;;  %v2047_v4 = vmul.f32 %v1985_v55, %v1761_v53  ;;  %v1477_v43 = vadd.f32 %v1413_v34, %v1338_v15  ;;  %v1277_v1 = vpop.f32.mrf.mxu1 }
 0x20e   : > { %v1339_v29 = vadd.f32 %v1277_v1, %v3584_v14 }
 0x20f   : > { %v2074_v21 = vadd.f32 %v2073_v60, %v2047_v4  ;;  %v1620_v38 = vadd.f32 %v1556_v59, %v1477_v43  ;;  %v1904_v59 = vpop.permute.xlu1 %1903 }
 0x210   : > { %2448 = vmatmul.msk.f32.gmra.mxu1 %vm362_vm2, %v1219_v9  ;;  %v1701_v23 = vpop.f32.mrf.mxu0 }
 0x211   : > { %v1762_v6 = vadd.f32 %v1698_v10, %v1620_v38  ;;  %2478 = vmatmul.msk.f32.gmra.mxu2 %vm362_vm2, %v270_v41 }
 0x212   : > { %2508 = vmatmul.msk.f32.gmra.mxu3 %vm362_vm2, %v1501_v27 }
 0x213   : > { %1790 = vst [vmem:[%s3843_s30 + $0x50] sm:$0xff] %v1762_v6  ;;  %v1986_v47 = vmul.f32 %v1889_v28, %v1762_v6  ;;  %2538 = vmatmul.msk.f32.gmra.mxu0 %vm362_vm2, %v1643_v2 }
 0x214   : > { %v1416_v18 = vpop.f32.mrf.mxu2 }
 0x215   : > { %v1559_v26 = vpop.f32.mrf.mxu3  ;;  %v2013_v22 = vadd.f32 %v2012_v40, %v1986_v47  ;;  %v2048_v45 = vmul.f32 %v1986_v47, %v1762_v6  ;;  %v1478_v49 = vadd.f32 %v1416_v18, %v1339_v29  ;;  %v1280_v9 = vpop.f32.mrf.mxu1 }
 0x216   : > { %v1340_v56 = vadd.f32 %v1280_v9, %v3598_v32  ;;  %v1909_v6 = vpop.permute.xlu2 %1908 }
 0x217   : > { %v2075_v24 = vadd.f32 %v2074_v21, %v2048_v45  ;;  %v1621_v52 = vadd.f32 %v1559_v26, %v1478_v49 }
 0x218   : > { %v1704_v50 = vpop.f32.mrf.mxu0 }
 0x219   : > { %v1763_v41 = vadd.f32 %v1701_v23, %v1621_v52 }
 0x21b   : > { %1791 = vst [vmem:[%s3843_s30 + $0x58] sm:$0xff] %v1763_v41  ;;  %v1987_v14 = vmul.f32 %v1894_v20, %v1763_v41 }
 0x21c   : > { %v1419_v30 = vpop.f32.mrf.mxu2 }
 0x21d   : > { %v1562_v37 = vpop.f32.mrf.mxu3  ;;  %v2014_v46 = vadd.f32 %v2013_v22, %v1987_v14  ;;  %v2049_v39 = vmul.f32 %v1987_v14, %v1763_v41  ;;  %v1479_v61 = vadd.f32 %v1419_v30, %v1340_v56  ;;  %v1283_v35 = vpop.f32.mrf.mxu1 }
 0x21e   : > { %v1341_v33 = vadd.f32 %v1283_v35, %v3612_v3  ;;  %v1914_v56 = vpop.permute.xlu0 %1913 }
 0x21f   : > { %v2076_v17 = vadd.f32 %v2075_v24, %v2049_v39  ;;  %v1622_v63 = vadd.f32 %v1562_v37, %v1479_v61 }
 0x220   : > { %v1707_v60 = vpop.f32.mrf.mxu0 }
 0x221   : > { %v1764_v54 = vadd.f32 %v1704_v50, %v1622_v63 }
 0x223   : > { %1792 = vst [vmem:[%s3843_s30 + $0x60] sm:$0xff] %v1764_v54  ;;  %v1988_v7 = vmul.f32 %v1899_v62, %v1764_v54 }
 0x224   : > { %v1422_v10 = vpop.f32.mrf.mxu2 }
 0x225   : > { %v1565_v32 = vpop.f32.mrf.mxu3  ;;  %v2015_v11 = vadd.f32 %v2014_v46, %v1988_v7  ;;  %v2050_v53 = vmul.f32 %v1988_v7, %v1764_v54  ;;  %v1480_v25 = vadd.f32 %v1422_v10, %v1341_v33  ;;  %v1286_v15 = vpop.f32.mrf.mxu1 }
 0x226   : > { %v1342_v4 = vadd.f32 %v1286_v15, %v3623_v31  ;;  %v1919_v54 = vpop.permute.xlu1 %1918 }
 0x227   : > { %v2077_v55 = vadd.f32 %v2076_v17, %v2050_v53  ;;  %v1623_v34 = vadd.f32 %v1565_v32, %v1480_v25 }
 0x228   : > { %v1710_v13 = vpop.f32.mrf.mxu0 }
 0x229   : > { %v1765_v40 = vadd.f32 %v1707_v60, %v1623_v34 }
 0x22b   : > { %1793 = vst [vmem:[%s3843_s30 + $0x68] sm:$0xff] %v1765_v40  ;;  %v1989_v43 = vmul.f32 %v1904_v59, %v1765_v40 }
 0x22c   : > { %v1425_v1 = vpop.f32.mrf.mxu2 }
 0x22d   : > { %v1568_v3 = vpop.f32.mrf.mxu3  ;;  %v2016_v27 = vadd.f32 %v2015_v11, %v1989_v43  ;;  %v2051_v21 = vmul.f32 %v1989_v43, %v1765_v40  ;;  %v1481_v38 = vadd.f32 %v1425_v1, %v1342_v4  ;;  %v1289_v28 = vpop.f32.mrf.mxu1 }
 0x22e   : > { %v1343_v18 = vadd.f32 %v1289_v28, %v3634_v12 }
 0x22f   : > { %v2078_v23 = vadd.f32 %v2077_v55, %v2051_v21  ;;  %v1624_v2 = vadd.f32 %v1568_v3, %v1481_v38 }
 0x230   : > { %v1713_v29 = vpop.f32.mrf.mxu0 }
 0x231   : > { %v1766_v47 = vadd.f32 %v1710_v13, %v1624_v2  ;;  %v1924_v13 = vpop.permute.xlu2 %1923 }
 0x233   : > { %1794 = vst [vmem:[%s3843_s30 + $0x70] sm:$0xff] %v1766_v47  ;;  %v1990_v26 = vmul.f32 %v1909_v6, %v1766_v47  ;;  %v1929_v6 = vpop.permute.xlu0 %1928 }
 0x234   : > { %v1428_v22 = vpop.f32.mrf.mxu2 }
 0x235   : > { %v1571_v31 = vpop.f32.mrf.mxu3  ;;  %v2017_v45 = vadd.f32 %v2016_v27, %v1990_v26  ;;  %v2052_v49 = vmul.f32 %v1990_v26, %v1766_v47  ;;  %v1482_v9 = vadd.f32 %v1428_v22, %v1343_v18  ;;  %v1292_v24 = vpop.f32.mrf.mxu1 }
 0x236   : > { %v1344_v14 = vadd.f32 %v1292_v24, %v3648_v42 }
 0x237   : > { %v2079_v52 = vadd.f32 %v2078_v23, %v2052_v49  ;;  %v1625_v20 = vadd.f32 %v1571_v31, %v1482_v9 }
 0x238   : > { %v1716_v50 = vpop.f32.mrf.mxu0 }
 0x239   : > { %v1767_v41 = vadd.f32 %v1713_v29, %v1625_v20  ;;  %v1934_v20 = vpop.permute.xlu1 %1933 }
 0x23b   : > { %1795 = vst [vmem:[%s3843_s30 + $0x78] sm:$0xff] %v1767_v41  ;;  %v1991_v30 = vmul.f32 %v1914_v56, %v1767_v41 }
 0x23c   : > { %v1431_v37 = vpop.f32.mrf.mxu2 }
 0x23d   : > { %v1574_v12 = vpop.f32.mrf.mxu3  ;;  %v2018_v46 = vadd.f32 %v2017_v45, %v1991_v30  ;;  %v2053_v39 = vmul.f32 %v1991_v30, %v1767_v41  ;;  %v1483_v61 = vadd.f32 %v1431_v37, %v1344_v14  ;;  %v1295_v35 = vpop.f32.mrf.mxu1 }
 0x23e   : > { %v1345_v33 = vadd.f32 %v1295_v35, %v3665_v19 }
 0x23f   : > { %v2080_v17 = vadd.f32 %v2079_v52, %v2053_v39  ;;  %v1626_v63 = vadd.f32 %v1574_v12, %v1483_v61 }
 0x240   : > { %v1719_v62 = vpop.f32.mrf.mxu0 }
 0x241   : > { %v1768_v60 = vadd.f32 %v1716_v50, %v1626_v63 }
 0x243   : > { %1796 = vst [vmem:[%s3843_s30 + $0x80] sm:$0xff] %v1768_v60  ;;  %v1992_v7 = vmul.f32 %v1919_v54, %v1768_v60 }
 0x244   : > { %v1434_v10 = vpop.f32.mrf.mxu2 }
 0x245   : > { %v1577_v42 = vpop.f32.mrf.mxu3  ;;  %v2019_v32 = vadd.f32 %v2018_v46, %v1992_v7  ;;  %v2054_v11 = vmul.f32 %v1992_v7, %v1768_v60  ;;  %v1484_v53 = vadd.f32 %v1434_v10, %v1345_v33  ;;  %v1298_v25 = vpop.f32.mrf.mxu1 }
 0x246   : > { %v1346_v40 = vadd.f32 %v1298_v25, %v3679_v0  ;;  %v1944_v25 = vpop.permute.xlu0 %1943 }
 0x247   : > { %v2081_v15 = vadd.f32 %v2080_v17, %v2054_v11  ;;  %v1627_v55 = vadd.f32 %v1577_v42, %v1484_v53  ;;  %v1939_v17 = vpop.permute.xlu2 %1938 }
 0x248   : > { %v1722_v34 = vpop.f32.mrf.mxu0 }
 0x249   : > { %v1769_v59 = vadd.f32 %v1719_v62, %v1627_v55 }
 0x24b   : > { %1797 = vst [vmem:[%s3843_s30 + $0x88] sm:$0xff] %v1769_v59  ;;  %v1993_v4 = vmul.f32 %v1924_v13, %v1769_v59 }
 0x24c   : > { %v1437_v43 = vpop.f32.mrf.mxu2 }
 0x24d   : > { %v1580_v19 = vpop.f32.mrf.mxu3  ;;  %v2020_v1 = vadd.f32 %v2019_v32, %v1993_v4  ;;  %v2055_v3 = vmul.f32 %v1993_v4, %v1769_v59  ;;  %v1485_v27 = vadd.f32 %v1437_v43, %v1346_v40  ;;  %v1301_v21 = vpop.f32.mrf.mxu1 }
 0x24e   : > { %v1347_v29 = vadd.f32 %v1301_v21, %v3693_v57 }
 0x24f   : > { %v2082_v38 = vadd.f32 %v2081_v15, %v2055_v3  ;;  %v1628_v28 = vadd.f32 %v1580_v19, %v1485_v27  ;;  %v1949_v27 = vpop.permute.xlu1 %1948 }
 0x250   : > { %v1725_v23 = vpop.f32.mrf.mxu0 }
 0x251   : > { %v1770_v2 = vadd.f32 %v1722_v34, %v1628_v28 }
 0x253   : > { %1798 = vst [vmem:[%s3843_s30 + $0x90] sm:$0xff] %v1770_v2  ;;  %v1994_v47 = vmul.f32 %v1929_v6, %v1770_v2 }
 0x254   : > { %v1440_v18 = vpop.f32.mrf.mxu2 }
 0x255   : > { %v1583_v0 = vpop.f32.mrf.mxu3  ;;  %v2021_v26 = vadd.f32 %v2020_v1, %v1994_v47  ;;  %v2056_v22 = vmul.f32 %v1994_v47, %v1770_v2  ;;  %v1486_v31 = vadd.f32 %v1440_v18, %v1347_v29  ;;  %v1304_v45 = vpop.f32.mrf.mxu1 }
 0x256   : > { %v1348_v50 = vadd.f32 %v1304_v45, %v3707_v36 }
 0x257   : > { %v2083_v49 = vadd.f32 %v2082_v38, %v2056_v22  ;;  %v1629_v9 = vadd.f32 %v1583_v0, %v1486_v31  ;;  %v1954_v22 = vpop.permute.xlu2 %1953 }
 0x258   : > { %v1728_v24 = vpop.f32.mrf.mxu0 }
 0x259   : > { %v1771_v52 = vadd.f32 %v1725_v23, %v1629_v9 }
 0x25b   : > { %1799 = vst [vmem:[%s3843_s30 + $0x98] sm:$0xff] %v1771_v52  ;;  %v1995_v41 = vmul.f32 %v1934_v20, %v1771_v52 }
 0x25c   : > { %v1443_v56 = vpop.f32.mrf.mxu2 }
 0x25d   : > { %v1586_v57 = vpop.f32.mrf.mxu3  ;;  %v2022_v14 = vadd.f32 %v2021_v26, %v1995_v41  ;;  %v2057_v30 = vmul.f32 %v1995_v41, %v1771_v52  ;;  %v1487_v37 = vadd.f32 %v1443_v56, %v1348_v50  ;;  %v1307_v12 = vpop.f32.mrf.mxu1 }
 0x25e   : > { %v1349_v63 = vadd.f32 %v1307_v12, %v3721_v58 }
 0x25f   : > { %v2084_v46 = vadd.f32 %v2083_v49, %v2057_v30  ;;  %v1630_v39 = vadd.f32 %v1586_v57, %v1487_v37 }
 0x260   : > { %v1731_v61 = vpop.f32.mrf.mxu0 }
 0x261   : > { %v1772_v35 = vadd.f32 %v1728_v24, %v1630_v39 }
 0x263   : > { %1800 = vst [vmem:[%s3843_s30 + $0xa0] sm:$0xff] %v1772_v35  ;;  %v1996_v62 = vmul.f32 %v1939_v17, %v1772_v35 }
 0x264   : > { %v1446_v60 = vpop.f32.mrf.mxu2 }
 0x265   : > { %v1589_v36 = vpop.f32.mrf.mxu3  ;;  %v2023_v54 = vadd.f32 %v2022_v14, %v1996_v62  ;;  %v2058_v33 = vmul.f32 %v1996_v62, %v1772_v35  ;;  %v1488_v7 = vadd.f32 %v1446_v60, %v1349_v63  ;;  %v1310_v10 = vpop.f32.mrf.mxu1 }
 0x266   : > { %v1350_v15 = vadd.f32 %v1310_v10, %v3735_v51  ;;  %v1959_v14 = vpop.permute.xlu0 %1958  ;;  %v1964_v60 = vpop.permute.xlu1 %1963 }
 0x267   : > { %v2085_v42 = vadd.f32 %v2084_v46, %v2058_v33  ;;  %v1631_v32 = vadd.f32 %v1589_v36, %v1488_v7 }
 0x268   : > { %v1734_v11 = vpop.f32.mrf.mxu0 }
 0x269   : > { %v1773_v53 = vadd.f32 %v1731_v61, %v1631_v32 }
 0x26b   : > { %1801 = vst [vmem:[%s3843_s30 + $0xa8] sm:$0xff] %v1773_v53  ;;  %v1997_v55 = vmul.f32 %v1944_v25, %v1773_v53 }
 0x26c   : > { %v1449_v34 = vpop.f32.mrf.mxu2 }
 0x26d   : > { %v1592_v58 = vpop.f32.mrf.mxu3  ;;  %v2024_v59 = vadd.f32 %v2023_v54, %v1997_v55  ;;  %v2059_v13 = vmul.f32 %v1997_v55, %v1773_v53  ;;  %v1489_v40 = vadd.f32 %v1449_v34, %v1350_v15  ;;  %v1313_v4 = vpop.f32.mrf.mxu1 }
 0x26e   : > { %v1351_v21 = vadd.f32 %v1313_v4, %v3749_v44  ;;  %v1969_v55 = vpop.permute.xlu2 %1968 }
 0x26f   : > { %v2086_v43 = vadd.f32 %v2085_v42, %v2059_v13  ;;  %v1632_v19 = vadd.f32 %v1592_v58, %v1489_v40 }
 0x270   : > { %v1737_v1 = vpop.f32.mrf.mxu0 }
 0x271   : > { %v1774_v3 = vadd.f32 %v1734_v11, %v1632_v19 }
 0x273   : > { %1802 = vst [vmem:[%s3843_s30 + $0xb0] sm:$0xff] %v1774_v3  ;;  %v1998_v38 = vmul.f32 %v1949_v27, %v1774_v3  ;;  %v1974_v27 = vpop.permute.xlu0 %1973 }
 0x274   : > { %v1452_v28 = vpop.f32.mrf.mxu2 }
 0x275   : > { %v1595_v51 = vpop.f32.mrf.mxu3  ;;  %v2025_v23 = vadd.f32 %v2024_v59, %v1998_v38  ;;  %v2060_v2 = vmul.f32 %v1998_v38, %v1774_v3  ;;  %v1490_v6 = vadd.f32 %v1452_v28, %v1351_v21  ;;  %v1316_v29 = vpop.f32.mrf.mxu1 }
 0x276   : > { %v1352_v31 = vadd.f32 %v1316_v29, %v3766_v16 }
 0x277   : > { %v2087_v47 = vadd.f32 %v2086_v43, %v2060_v2  ;;  %v1633_v18 = vadd.f32 %v1595_v51, %v1490_v6 }
 0x278   : > { %v1740_v0 = vpop.f32.mrf.mxu0 }
 0x279   : > { %v1775_v26 = vadd.f32 %v1737_v1, %v1633_v18 }
 0x27b   : > { %1803 = vst [vmem:[%s3843_s30 + $0xb8] sm:$0xff] %v1775_v26  ;;  %v1999_v45 = vmul.f32 %v1954_v22, %v1775_v26 }
 0x27c   : > { %v1455_v49 = vpop.f32.mrf.mxu2 }
 0x27d   : > { %v1598_v44 = vpop.f32.mrf.mxu3  ;;  %v2026_v9 = vadd.f32 %v2025_v23, %v1999_v45  ;;  %v2061_v24 = vmul.f32 %v1999_v45, %v1775_v26  ;;  %v1491_v52 = vadd.f32 %v1455_v49, %v1352_v31  ;;  %v1319_v20 = vpop.f32.mrf.mxu1 }
 0x27e   : > { %v1353_v30 = vadd.f32 %v1319_v20, %v3780_v5 }
 0x27f   : > { %v2088_v50 = vadd.f32 %v2087_v47, %v2061_v24  ;;  %v1634_v41 = vadd.f32 %v1598_v44, %v1491_v52 }
 0x280   : > { %v1743_v57 = vpop.f32.mrf.mxu0 }
 0x281   : > { %v1776_v56 = vadd.f32 %v1740_v0, %v1634_v41 }
 0x283   : > { %1804 = vst [vmem:[%s3843_s30 + $0xc0] sm:$0xff] %v1776_v56  ;;  %v2000_v37 = vmul.f32 %v1959_v14, %v1776_v56 }
 0x284   : > { %v1458_v12 = vpop.f32.mrf.mxu2 }
 0x285   : > { %v1601_v16 = vpop.f32.mrf.mxu3  ;;  %v2027_v46 = vadd.f32 %v2026_v9, %v2000_v37  ;;  %v2062_v39 = vmul.f32 %v2000_v37, %v1776_v56  ;;  %v1492_v61 = vadd.f32 %v1458_v12, %v1353_v30  ;;  %v1322_v35 = vpop.f32.mrf.mxu1 }
 0x286   : > { %v1354_v36 = vadd.f32 %v1322_v35, %v3797_v48 }
 0x287   : > { %v2089_v17 = vadd.f32 %v2088_v50, %v2062_v39  ;;  %v1635_v63 = vadd.f32 %v1601_v16, %v1492_v61 }
 0x288   : > { %v1746_v33 = vpop.f32.mrf.mxu0 }
 0x289   : > { %v1777_v62 = vadd.f32 %v1743_v57, %v1635_v63 }
 0x28b   : > { %1805 = vst [vmem:[%s3843_s30 + $0xc8] sm:$0xff] %v1777_v62  ;;  %v2001_v54 = vmul.f32 %v1964_v60, %v1777_v62 }
 0x28c   : > { %v1461_v5 = vpop.f32.mrf.mxu2 }
 0x28d   : > { %v1604_v7 = vpop.f32.mrf.mxu3  ;;  %v2028_v10 = vadd.f32 %v2027_v46, %v2001_v54  ;;  %v2063_v42 = vmul.f32 %v2001_v54, %v1777_v62  ;;  %v1493_v32 = vadd.f32 %v1461_v5, %v1354_v36  ;;  %v1325_v25 = vpop.f32.mrf.mxu1 }
 0x28e   : > { %v1355_v48 = vadd.f32 %v1325_v25, %v3817_v8 }
 0x28f   : > { %v2090_v11 = vadd.f32 %v2089_v17, %v2063_v42  ;;  %v1636_v53 = vadd.f32 %v1604_v7, %v1493_v32 }
 0x290   : > { %v1749_v43 = vpop.f32.mrf.mxu0 }
 0x291   : > { %v1778_v15 = vadd.f32 %v1746_v33, %v1636_v53 }
 0x293   : > { %1806 = vst [vmem:[%s3843_s30 + $0xd0] sm:$0xff] %v1778_v15  ;;  %v2002_v34 = vmul.f32 %v1969_v55, %v1778_v15 }
 0x294   : > { %v1464_v58 = vpop.f32.mrf.mxu2 }
 0x295   : > { %v1607_v59 = vpop.f32.mrf.mxu3  ;;  %v2029_v13 = vadd.f32 %v2028_v10, %v2002_v34  ;;  %v2064_v40 = vmul.f32 %v2002_v34, %v1778_v15  ;;  %v1494_v4 = vadd.f32 %v1464_v58, %v1355_v48 }
 0x297   : > { %v2091_v19 = vadd.f32 %v2090_v11, %v2064_v40  ;;  %v1637_v1 = vadd.f32 %v1607_v59, %v1494_v4 }
 0x299   : > { %v1779_v3 = vadd.f32 %v1749_v43, %v1637_v1 }
 0x29b   : > { %1807 = vst [vmem:[%s3843_s30 + $0xd8] sm:$0xff] %v1779_v3  ;;  %v2003_v8 = vmul.f32 %v1974_v27, %v1779_v3 }
 0x29c   : > { %2645 = shalt.err (!%p2642_p3)
}
 0x29d   : > { %s2743_s30 = smov 128   ;;  %s2744_s17 = smov 8   ;;  %v2030_v21 = vadd.f32 %v2029_v13, %v2003_v8  ;;  %v2065_v38 = vmul.f32 %v2003_v8, %v1779_v3 }
 0x29e   : > { %2548 = dma.vmem_to_hbm [thread:$0]  (%p2815_p5), %s2122_s7, 3584, %s2124_s8, %s2101_s9, %s2743_s30, %s2743_s30, %s2744_s17  }
 0x29f   : > { %v2031_v28 = vrot.slane %v2030_v21, 4  ;;  %v2092_v51 = vadd.f32 %v2091_v19, %v2065_v38  ;;  %s2135_s10 = scalar_lea.hbm %s4089_s4, %s2796_s22  ;;  %s2105_s11 = sand.u32 1, %s2796_s22  }
 0x2a0   : > { %s2148_s7 = scalar_lea.hbm %s4090_s5, %s2796_s22  ;;  %s227_s8 = scalar_lea.vmem [#allocation4], %s3824_s13 }
 0x2a1   : > { %v2032_v23 = vadd.f32 %v2031_v28, %v2030_v21  ;;  %v2093_v2 = vrot.slane %v2092_v51, 4  ;;  %s4027_s9 = sshll.u32 %s227_s8, 4  ;;  %s4029_s15 = sshll.u32 %s2135_s10, 4  ;;  %s2138_s9 = int_to_ptr.vmem [resolvable:$true] %s4027_s9  ;;  %s2140_s15 = int_to_ptr.hbm [resolvable:$true] %s4029_s15 }
 0x2a2   : > { %s233_s16 = scalar_lea.vmem [#allocation6], %s3824_s13  ;;  %s4034_s30 = sshll.u32 %s2148_s7, 4  ;;  %s2153_s30 = int_to_ptr.hbm [resolvable:$true] %s4034_s30 }
 0x2a3   : > { %v2094_v6 = vadd.f32 %v2093_v2, %v2092_v51  ;;  %v2033_v29 = vrot.slane %v2032_v23, 2  ;;  %s4032_s26 = sshll.u32 %s233_s16, 4  ;;  %s2106_s22 = scalar_lea.sflag [#allocation5], %s2105_s11  ;;  %s2151_s26 = int_to_ptr.vmem [resolvable:$true] %s4032_s26 }
 0x2a4   : > { %s2660_s17 = sshra.s32 %s2140_s15, 4  ;;  %s2666_s10 = scalar_lea.hbm %s4089_s4, 2  ;;  %s2661_s17 = int_to_ptr.hbm [resolvable:$true] %s2660_s17 }
 0x2a5   : > { %v2095_v47 = vrot.slane %v2094_v6, 2  ;;  %v2034_v18 = vadd.f32 %v2033_v29, %v2032_v23  ;;  %s2662_s25 = scalar_lea.hbm %s2661_s17, 1  ;;  %p2667_p9 = scmp.lt.s32.totalorder %s2661_s17, %s4089_s4 }
 0x2a6   : > { %p2663_p4 = scmp.ne.s32.totalorder %s2661_s17, %s2662_s25  ;;  %p2668_p10 = scmp.lt.s32.totalorder %s2666_s10, %s2662_s25 }
 0x2a7   : > { %v2035_v0 = vrot.slane %v2034_v18, 1  ;;  %v2096_v26 = vadd.f32 %v2095_v47, %v2094_v6 }
 0x2a8   : > { %p2664_p7 = pnand %p2663_p4, %p2815_p5  ;;  %p2669_p11 = por %p2668_p10, %p2667_p9 }
 0x2a9   : > { %v2036_v22 = vadd.f32 %v2035_v0, %v2034_v18  ;;  %v2097_v31 = vrot.slane %v2096_v26, 1 }
 0x2aa   : > { %p2665_p8 = pneg %p2664_p7 }
 0x2ab   : > { %2037 = vst [vmem:[%s227_s8] sm:$0x1] %v2036_v22  ;;  %v2098_v45 = vadd.f32 %v2097_v31, %v2096_v26 }
 0x2ac   : > { %p2670_p12 = pnand %p2669_p11, %p2665_p8 }
 0x2ae   : > { %2673 = shalt.err (!%p2670_p12)
}
 0x2af   : > { %2549 = dma.vmem_to_hbm [thread:$0]  (%p2815_p5), %s2138_s9, 16, %s2140_s15, %s2106_s22   ;;  %2099 = vst [vmem:[%s233_s16] sm:$0x1] %v2098_v45 }
 0x2b0   : > { %s2688_s11 = sshra.s32 %s2153_s30, 4  ;;  %s2694_s25 = scalar_lea.hbm %s4090_s5, 2  ;;  %s2689_s11 = int_to_ptr.hbm [resolvable:$true] %s2688_s11 }
 0x2b1   : > { %s2690_s7 = scalar_lea.hbm %s2689_s11, 1  ;;  %p2695_p2 = scmp.lt.s32.totalorder %s2689_s11, %s4090_s5 }
 0x2b2   : > { %p2691_p13 = scmp.ne.s32.totalorder %s2689_s11, %s2690_s7  ;;  %p2696_p3 = scmp.lt.s32.totalorder %s2694_s25, %s2690_s7 }
 0x2b4   : > { %p2692_p0 = pnand %p2691_p13, %p2815_p5  ;;  %p2697_p4 = por %p2696_p3, %p2695_p2 }
 0x2b6   : > { %p2693_p1 = pneg %p2692_p0 }
 0x2b8   : > { %p2698_p7 = pnand %p2697_p4, %p2693_p1 }
 0x2ba   : > { %2701 = shalt.err (!%p2698_p7)
}
 0x2bb   : > { %2550 = dma.vmem_to_hbm [thread:$0]  (%p2815_p5), %s2151_s26, 16, %s2153_s30, %s2106_s22  }
 0x2bc PF: > { %p2564_p8 = scmp.ge.s32.totalorder %s2740_s21, 2  ;;  %s2164_s9 = sand.u32 1, %s2728_s18  }
 0x2bd   : > { %s2165_s15 = scalar_lea.sflag [#allocation3], %s2164_s9 }
 0x2be   : > { %p2555_p9 = pnand %p2564_p8, %p2819_p6 }
 0x2c0   : > { %p2556_p10 = pneg %p2555_p9 }
 0x2c2   : > { %2719 = dma.done.wait (%p2556_p10), %s2165_s15, 3584  }
 0x2c3   : > { %2721 = vsyncadd (%p2556_p10), %s2165_s15, 4294963712  ;;  %s2174_s28 = sand.u32 1, %s2265_s23  }
 0x2c4   : > { %s2175_s16 = scalar_lea.sflag [#allocation5], %s2174_s28 }
 0x2c5   : > { %2723 = dma.done.wait (%p2556_p10), %s2175_s16, 32  }
 0x2c6   : > { %2725 = vsyncadd (%p2556_p10), %s2175_s16, 4294967264  ;;  %p19_p5 = scmp.ge.s32.totalorder %s2800_s24, 4   ;;  %s4218_s18 = smov %s2732_s19 }
 0x2c7   : > { %s4219_s19 = smov %s2736_s20  ;;  %s4220_s20 = smov %s2813_s27 }
 0x2c8   : > { %s4221_s21 = smov %s2800_s24  ;;  %21 = sbr.rel (!%p19_p5) target bundleno = 5 (0x5), region = 107 }
 0x2cd   :  { %2189 = vsyncpa [#allocation3], 1 }
 0x2ce   :  { %2191 = vsyncpa [#allocation3 + $0x1], 1 }
 0x2cf   :  { %2192 = vsyncpa [#allocation5], 1 }
 0x2d0   :  { %2194 = vsyncpa [#allocation5 + $0x1], 1 }

</bundles_post_ra>
